<compile_context>
chip_gen: v6e
topology: v6e:2x2x1
jax: 0.10.0
libtpu: 0.0.40
codegen_flags: <defaults>
</compile_context>

<pallas_src>
import functools

import numpy as np
import jax
import jax.numpy as jnp
from jax.experimental import pallas as pl
from jax.experimental.pallas import tpu as pltpu


def cbam_kernel(x_ref, w1bd_ref, w2bd_ref, t_ref, bias_ref, o_ref, *, n_img, chan):
    """One grid step: `n_img` images, each with `chan` channels.

    x_ref/o_ref: (n_img*chan, HW)   w1bd/w2bd: block-diagonal MLP weights
    t_ref: (2*HW, HW) full-conv Toeplitz matrix   bias_ref: (1, HW) conv bias.
    """
    BC, HW = x_ref.shape
    x = x_ref[...].astype(jnp.float32)                       # (BC, HW) lane-dense

    # ---------------- Channel attention ----------------
    # max -> XLU lane reduce; mean -> MXU dot-with-ones (co-issues with the max).
    maxp = jnp.max(x, axis=1, keepdims=True)                  # (BC, 1)
    ones_hw = jnp.ones((HW, 1), jnp.float32)
    avgp = jnp.dot(x, ones_hw,
                   preferred_element_type=jnp.float32) * (1.0 / HW)   # (BC, 1)
    pooled = jnp.concatenate([maxp, avgp], axis=1)            # (BC, 2)

    # Fused shared MLP, batched over images via block-diagonal weights.
    # w2(relu(w1 m)) + w2(relu(w1 a)) == w2(relu(w1 m) + relu(w1 a)) (exact).
    h = jnp.maximum(
        jnp.dot(w1bd_ref[...], pooled, preferred_element_type=jnp.float32), 0.0)
    se = jnp.dot(w2bd_ref[...], h[:, 0:1] + h[:, 1:2],
                 preferred_element_type=jnp.float32)          # (BC, 1)
    ca = jax.nn.sigmoid(se)
    out1 = x * ca                                             # (BC, HW)

    # ---------------- Spatial attention ----------------
    # Per-image channel max (XLU) + channel mean, kept as lane-dense (1, HW)
    # rows; the entire 7x7 conv (kh, kw, both channels, padding, bias) is one
    # (n_img, 2*HW) @ (2*HW, HW) MXU matmul against the precomputed Toeplitz
    # matrix -- no reshapes to (H, W), no sub-128-lane work.
    rows = []
    for b in range(n_img):                                    # static, n_img <= 2
        blk = out1[b * chan:(b + 1) * chan, :]                # (C, HW), aligned rows
        maxc = jnp.max(blk, axis=0, keepdims=True)            # (1, HW)
        avgc = jnp.mean(blk, axis=0, keepdims=True)           # (1, HW)
        rows.append(jnp.concatenate([maxc, avgc], axis=1))    # (1, 2*HW)
    smap = jnp.concatenate(rows, axis=0)                      # (n_img, 2*HW)

    conv = jnp.dot(smap, t_ref[...],
                   preferred_element_type=jnp.float32) + bias_ref[...]  # (n_img, HW)
    sa = jax.nn.sigmoid(conv)                                 # (n_img, HW)

    parts = [out1[b * chan:(b + 1) * chan, :] * sa[b:b + 1, :]
             for b in range(n_img)]
    out2 = jnp.concatenate(parts, axis=0)                     # (BC, HW)
    o_ref[...] = (out2 + x).astype(o_ref.dtype)               # + residual, full vst


def build_conv_toeplitz(wconv, H, W, K):
    """Full Toeplitz matrix for the padded 7x7 2->1 conv on a flattened map.

    T[c*HW + ii*W + ji, io*W + jo] = wconv[0, c, dh, dw] with ii = io + dh - P,
    ji = jo + dw - P (taps outside the image are dropped == zero padding), so
    (smap @ T)[b, io*W + jo] reproduces the conv exactly.
    """
    P = K // 2
    HW = H * W
    w = np.asarray(wconv).reshape(2, K, K)
    T = np.zeros((2 * HW, HW), np.float32)
    for c in range(2):
        for dh in range(K):
            for dw in range(K):
                wv = w[c, dh, dw]
                for io in range(H):
                    ii = io + dh - P
                    if not (0 <= ii < H):
                        continue
                    for jo in range(W):
                        ji = jo + dw - P
                        if not (0 <= ji < W):
                            continue
                        T[c * HW + ii * W + ji, io * W + jo] = wv
    return jnp.asarray(T)


def _block_diag(w, n):
    """n copies of w along the diagonal (batches the per-image MLP matmuls)."""
    r, c = w.shape
    out = jnp.zeros((n * r, n * c), w.dtype)
    for i in range(n):
        out = out.at[i * r:(i + 1) * r, i * c:(i + 1) * c].set(w)
    return out


def _num_tensorcores_per_chip():
    try:
        kind = jax.devices()[0].device_kind.lower()
    except Exception:
        return 1
    # 2 TensorCores per device on v7x (and v4 megacore); 1 on v2/v3/v5e/v6e.
    return 2 if ("v7" in kind or "v4" in kind) else 1


def cbam_forward(x, w1, w2, wconv, bconv, *, kernel_size=7):
    B, C, H, W = x.shape
    HW = H * W
    cr = w1.shape[0]
    K = kernel_size

    # Generation-aware grid: one step per TensorCore (merge the batch on 1-TC
    # chips, split it 2-way "parallel" on 2-TC chips).
    num_tc = _num_tensorcores_per_chip()
    G = num_tc
    if G > 1 and (B % G != 0 or ((B // G) * C) % 8 != 0 or HW % 128 != 0):
        G = 1
    n_img = B // G            # images per grid step
    BC = n_img * C

    t_full = build_conv_toeplitz(wconv, H, W, K)              # (2*HW, HW)
    w1bd = _block_diag(w1.astype(jnp.float32), n_img)         # (n_img*cr, BC)
    w2bd = _block_diag(w2.astype(jnp.float32), n_img)         # (BC, n_img*cr)
    bias_row = jnp.full((1, HW), bconv[0], dtype=jnp.float32) # conv bias in VMEM

    x_flat = x.reshape(B * C, HW)                             # lane-dense layout
    kernel = functools.partial(cbam_kernel, n_img=n_img, chan=C)
    out_flat = pl.pallas_call(
        kernel,
        out_shape=jax.ShapeDtypeStruct((B * C, HW), x.dtype),
        grid=(G,),
        in_specs=[
            pl.BlockSpec((BC, HW), lambda g: (g, 0)),
            pl.BlockSpec((n_img * cr, BC), lambda g: (0, 0)),
            pl.BlockSpec((BC, n_img * cr), lambda g: (0, 0)),
            pl.BlockSpec((2 * HW, HW), lambda g: (0, 0)),
            pl.BlockSpec((1, HW), lambda g: (0, 0)),
        ],
        out_specs=pl.BlockSpec((BC, HW), lambda g: (g, 0)),
        compiler_params=pltpu.CompilerParams(
            dimension_semantics=("parallel",)),
    )(x_flat, w1bd, w2bd, t_full, bias_row)
    return out_flat.reshape(B, C, H, W)


def cbam_reference(x, w1, w2, wconv, bconv):
    """Pure-JAX reference matching the PyTorch module semantics."""
    hi = jax.lax.Precision.HIGHEST
    maxp = jnp.max(x, axis=(2, 3))                            # (B, C)
    avgp = jnp.mean(x, axis=(2, 3))                           # (B, C)

    def se(p):
        h = jax.nn.relu(jnp.dot(p, w1.T, precision=hi))
        return jnp.dot(h, w2.T, precision=hi)

    ca = jax.nn.sigmoid(se(maxp) + se(avgp))[:, :, None, None]
    out1 = x * ca
    maxc = jnp.max(out1, axis=1, keepdims=True)
    avgc = jnp.mean(out1, axis=1, keepdims=True)
    inp = jnp.concatenate([maxc, avgc], axis=1)               # (B, 2, H, W)
    conv = jax.lax.conv_general_dilated(
        inp, wconv, window_strides=(1, 1), padding=((3, 3), (3, 3)),
        dimension_numbers=("NCHW", "OIHW", "NCHW"), precision=hi)
    conv = conv + bconv.reshape(1, 1, 1, 1)
    sa = jax.nn.sigmoid(conv)
    return out1 * sa + x


def init_params(key, channel, reduction, kernel_size):
    cr = channel // reduction
    k1, k2, k3, k4 = jax.random.split(key, 4)
    # Conv2d(C, C//r, 1, bias=False).weight -> (C//r, C, 1, 1) squeezed
    w1 = jax.random.normal(k1, (cr, channel), jnp.float32) * (2.0 / channel) ** 0.5
    # Conv2d(C//r, C, 1, bias=False).weight -> (C, C//r, 1, 1) squeezed
    w2 = jax.random.normal(k2, (channel, cr), jnp.float32) * (2.0 / cr) ** 0.5
    # Conv2d(2, 1, 7, padding=3).weight -> (1, 2, 7, 7), bias -> (1,)
    wconv = jax.random.normal(k3, (1, 2, kernel_size, kernel_size),
                              jnp.float32) * 0.1
    bconv = jax.random.normal(k4, (1,), jnp.float32) * 0.1
    return w1, w2, wconv, bconv


if __name__ == "__main__":
    B, C, H, W = 2, 64, 16, 16
    reduction, ksize = 16, 7

    key = jax.random.PRNGKey(0)
    kx, kp = jax.random.split(key)
    x = jax.random.normal(kx, (B, C, H, W), jnp.float32)
    w1, w2, wconv, bconv = init_params(kp, C, reduction, ksize)

    out = cbam_forward(x, w1, w2, wconv, bconv, kernel_size=ksize)
    out = jax.block_until_ready(out)

    ref = cbam_reference(x, w1, w2, wconv, bconv)
    err = float(jnp.max(jnp.abs(out - ref)))
    assert out.shape == (B, C, H, W) and jnp.isfinite(out).all(), err
    assert jnp.allclose(out, ref, atol=1e-3, rtol=1e-3), err
    print("KERNEL_OK")
</pallas_src>

<mosaic_0001>
module attributes {stable_mosaic.version = 11 : i64} {
  func.func @cbam_kernel(%arg0: i32, %arg1: memref<128x256xf32, #tpu.memory_space<vmem>>, %arg2: memref<8x128xf32, #tpu.memory_space<vmem>>, %arg3: memref<128x8xf32, #tpu.memory_space<vmem>>, %arg4: memref<512x256xf32, #tpu.memory_space<vmem>>, %arg5: memref<1x256xf32, #tpu.memory_space<vmem>>, %arg6: memref<128x256xf32, #tpu.memory_space<vmem>>) attributes {dimension_semantics = [#tpu.dimension_semantics<parallel>], iteration_bounds = array<i64: 1>, scalar_prefetch = 0 : i64, scratch_operands = 0 : i64, tpu.core_type = #tpu.core_type<tc>, window_params = [{transform_indices = @transform_0, window_bounds = array<i64: 128, 256>}, {pipeline_mode = #tpu.pipeline_mode<synchronous>, transform_indices = @transform_1, window_bounds = array<i64: 8, 128>}, {pipeline_mode = #tpu.pipeline_mode<synchronous>, transform_indices = @transform_2, window_bounds = array<i64: 128, 8>}, {pipeline_mode = #tpu.pipeline_mode<synchronous>, transform_indices = @transform_3, window_bounds = array<i64: 512, 256>}, {pipeline_mode = #tpu.pipeline_mode<synchronous>, transform_indices = @transform_4, window_bounds = array<i64: 1, 256>}, {transform_indices = @transform_5, window_bounds = array<i64: 128, 256>}]} {
    %c0 = arith.constant 0 : index
    %c0_0 = arith.constant 0 : index
    %0 = vector.load %arg1[%c0, %c0_0] : memref<128x256xf32, #tpu.memory_space<vmem>>, vector<128x256xf32>
    %cst = arith.constant dense<0xFF800000> : vector<128xf32>
    %1 = vector.multi_reduction <maximumf>, %0, %cst [1] : vector<128x256xf32> to vector<128xf32>
    %2 = vector.shape_cast %1 : vector<128xf32> to vector<128x1xf32>
    %cst_1 = arith.constant 1.000000e+00 : f32
    %3 = vector.broadcast %cst_1 : f32 to vector<256x1xf32>
    %cst_2 = arith.constant dense<0.000000e+00> : vector<128x1xf32>
    %4 = tpu.matmul %0, %3, %cst_2 {dimension_numbers = #tpu.dot_dimension_numbers<[1], [0], [0], [1], [0, 0, 1, 1], [], []>} : vector<128x256xf32>, vector<256x1xf32>, vector<128x1xf32> -> vector<128x1xf32>
    %cst_3 = arith.constant 3.906250e-03 : f32
    %5 = vector.broadcast %cst_3 : f32 to vector<128x1xf32>
    %6 = arith.mulf %4, %5 : vector<128x1xf32>
    %7 = tpu.concatenate %2, %6 in 1 : vector<128x1xf32>, vector<128x1xf32> -> vector<128x2xf32>
    %c0_4 = arith.constant 0 : index
    %c0_5 = arith.constant 0 : index
    %8 = vector.load %arg2[%c0_4, %c0_5] : memref<8x128xf32, #tpu.memory_space<vmem>>, vector<8x128xf32>
    %cst_6 = arith.constant dense<0.000000e+00> : vector<8x2xf32>
    %9 = tpu.matmul %8, %7, %cst_6 {dimension_numbers = #tpu.dot_dimension_numbers<[1], [0], [0], [1], [0, 0, 1, 1], [], []>} : vector<8x128xf32>, vector<128x2xf32>, vector<8x2xf32> -> vector<8x2xf32>
    %cst_7 = arith.constant 0.000000e+00 : f32
    %10 = vector.broadcast %cst_7 : f32 to vector<8x2xf32>
    %11 = arith.maximumf %9, %10 : vector<8x2xf32>
    %c0_8 = arith.constant 0 : index
    %c0_9 = arith.constant 0 : index
    %12 = vector.load %arg3[%c0_8, %c0_9] : memref<128x8xf32, #tpu.memory_space<vmem>>, vector<128x8xf32>
    %13 = vector.extract_strided_slice %11 {offsets = [0, 0], sizes = [8, 1], strides = [1, 1]} : vector<8x2xf32> to vector<8x1xf32>
    %14 = vector.extract_strided_slice %11 {offsets = [0, 1], sizes = [8, 1], strides = [1, 1]} : vector<8x2xf32> to vector<8x1xf32>
    %15 = arith.addf %13, %14 : vector<8x1xf32>
    %cst_10 = arith.constant dense<0.000000e+00> : vector<128x1xf32>
    %16 = tpu.matmul %12, %15, %cst_10 {dimension_numbers = #tpu.dot_dimension_numbers<[1], [0], [0], [1], [0, 0, 1, 1], [], []>} : vector<128x8xf32>, vector<8x1xf32>, vector<128x1xf32> -> vector<128x1xf32>
    %17 = arith.negf %16 : vector<128x1xf32>
    %18 = math.exp %17 : vector<128x1xf32>
    %cst_11 = arith.constant 1.000000e+00 : f32
    %19 = vector.broadcast %cst_11 : f32 to vector<128x1xf32>
    %20 = arith.addf %19, %18 : vector<128x1xf32>
    %21 = arith.divf %19, %20 : vector<128x1xf32>
    %22 = vector.broadcast %21 : vector<128x1xf32> to vector<128x256xf32>
    %23 = arith.mulf %0, %22 : vector<128x256xf32>
    %24 = vector.extract_strided_slice %23 {offsets = [0, 0], sizes = [64, 256], strides = [1, 1]} : vector<128x256xf32> to vector<64x256xf32>
    %cst_12 = arith.constant dense<0xFF800000> : vector<256xf32>
    %25 = vector.multi_reduction <maximumf>, %24, %cst_12 [0] : vector<64x256xf32> to vector<256xf32>
    %26 = vector.shape_cast %25 : vector<256xf32> to vector<1x256xf32>
    %cst_13 = arith.constant dense<0.000000e+00> : vector<256xf32>
    %27 = vector.multi_reduction <add>, %24, %cst_13 [0] : vector<64x256xf32> to vector<256xf32>
    %28 = vector.shape_cast %27 : vector<256xf32> to vector<1x256xf32>
    %cst_14 = arith.constant 6.400000e+01 : f32
    %29 = vector.broadcast %cst_14 : f32 to vector<1x256xf32>
    %30 = arith.divf %28, %29 : vector<1x256xf32>
    %31 = tpu.concatenate %26, %30 in 1 : vector<1x256xf32>, vector<1x256xf32> -> vector<1x512xf32>
    %32 = vector.extract_strided_slice %23 {offsets = [64, 0], sizes = [64, 256], strides = [1, 1]} : vector<128x256xf32> to vector<64x256xf32>
    %cst_15 = arith.constant dense<0xFF800000> : vector<256xf32>
    %33 = vector.multi_reduction <maximumf>, %32, %cst_15 [0] : vector<64x256xf32> to vector<256xf32>
    %34 = vector.shape_cast %33 : vector<256xf32> to vector<1x256xf32>
    %cst_16 = arith.constant dense<0.000000e+00> : vector<256xf32>
    %35 = vector.multi_reduction <add>, %32, %cst_16 [0] : vector<64x256xf32> to vector<256xf32>
    %36 = vector.shape_cast %35 : vector<256xf32> to vector<1x256xf32>
    %cst_17 = arith.constant 6.400000e+01 : f32
    %37 = vector.broadcast %cst_17 : f32 to vector<1x256xf32>
    %38 = arith.divf %36, %37 : vector<1x256xf32>
    %39 = tpu.concatenate %34, %38 in 1 : vector<1x256xf32>, vector<1x256xf32> -> vector<1x512xf32>
    %40 = tpu.concatenate %31, %39 in 0 : vector<1x512xf32>, vector<1x512xf32> -> vector<2x512xf32>
    %c0_18 = arith.constant 0 : index
    %c0_19 = arith.constant 0 : index
    %41 = vector.load %arg4[%c0_18, %c0_19] : memref<512x256xf32, #tpu.memory_space<vmem>>, vector<512x256xf32>
    %cst_20 = arith.constant dense<0.000000e+00> : vector<2x256xf32>
    %42 = tpu.matmul %40, %41, %cst_20 {dimension_numbers = #tpu.dot_dimension_numbers<[1], [0], [0], [1], [0, 0, 1, 1], [], []>} : vector<2x512xf32>, vector<512x256xf32>, vector<2x256xf32> -> vector<2x256xf32>
    %c0_21 = arith.constant 0 : index
    %c0_22 = arith.constant 0 : index
    %43 = vector.load %arg5[%c0_21, %c0_22] : memref<1x256xf32, #tpu.memory_space<vmem>>, vector<1x256xf32>
    %44 = vector.broadcast %43 : vector<1x256xf32> to vector<2x256xf32>
    %45 = arith.addf %42, %44 : vector<2x256xf32>
    %46 = arith.negf %45 : vector<2x256xf32>
    %47 = math.exp %46 : vector<2x256xf32>
    %cst_23 = arith.constant 1.000000e+00 : f32
    %48 = vector.broadcast %cst_23 : f32 to vector<2x256xf32>
    %49 = arith.addf %48, %47 : vector<2x256xf32>
    %50 = arith.divf %48, %49 : vector<2x256xf32>
    %51 = vector.extract_strided_slice %23 {offsets = [0, 0], sizes = [64, 256], strides = [1, 1]} : vector<128x256xf32> to vector<64x256xf32>
    %52 = vector.extract_strided_slice %50 {offsets = [0, 0], sizes = [1, 256], strides = [1, 1]} : vector<2x256xf32> to vector<1x256xf32>
    %53 = vector.broadcast %52 : vector<1x256xf32> to vector<64x256xf32>
    %54 = arith.mulf %51, %53 : vector<64x256xf32>
    %55 = vector.extract_strided_slice %23 {offsets = [64, 0], sizes = [64, 256], strides = [1, 1]} : vector<128x256xf32> to vector<64x256xf32>
    %56 = vector.extract_strided_slice %50 {offsets = [1, 0], sizes = [1, 256], strides = [1, 1]} : vector<2x256xf32> to vector<1x256xf32>
    %57 = vector.broadcast %56 : vector<1x256xf32> to vector<64x256xf32>
    %58 = arith.mulf %55, %57 : vector<64x256xf32>
    %59 = tpu.concatenate %54, %58 in 0 : vector<64x256xf32>, vector<64x256xf32> -> vector<128x256xf32>
    %60 = arith.addf %59, %0 : vector<128x256xf32>
    %c0_24 = arith.constant 0 : index
    %c0_25 = arith.constant 0 : index
    %61 = vector.load %arg6[%c0_24, %c0_25] : memref<128x256xf32, #tpu.memory_space<vmem>>, vector<128x256xf32>
    tpu.vector_store %arg6[%c0_24, %c0_25], %60 {strides = array<i32>} : memref<128x256xf32, #tpu.memory_space<vmem>>, vector<128x256xf32>,
    return
  }
  func.func @transform_0(%arg0: i32) -> (i32, i32) {
    %c0_i32 = arith.constant 0 : i32
    %c0_i32_0 = arith.constant 0 : i32
    return %arg0, %c0_i32 : i32, i32
  }
  func.func @transform_1(%arg0: i32) -> (i32, i32) {
    %c0_i32 = arith.constant 0 : i32
    %c0_i32_0 = arith.constant 0 : i32
    %c0_i32_1 = arith.constant 0 : i32
    return %c0_i32, %c0_i32_0 : i32, i32
  }
  func.func @transform_2(%arg0: i32) -> (i32, i32) {
    %c0_i32 = arith.constant 0 : i32
    %c0_i32_0 = arith.constant 0 : i32
    %c0_i32_1 = arith.constant 0 : i32
    return %c0_i32, %c0_i32_0 : i32, i32
  }
  func.func @transform_3(%arg0: i32) -> (i32, i32) {
    %c0_i32 = arith.constant 0 : i32
    %c0_i32_0 = arith.constant 0 : i32
    %c0_i32_1 = arith.constant 0 : i32
    return %c0_i32, %c0_i32_0 : i32, i32
  }
  func.func @transform_4(%arg0: i32) -> (i32, i32) {
    %c0_i32 = arith.constant 0 : i32
    %c0_i32_0 = arith.constant 0 : i32
    %c0_i32_1 = arith.constant 0 : i32
    return %c0_i32, %c0_i32_0 : i32, i32
  }
  func.func @transform_5(%arg0: i32) -> (i32, i32) {
    %c0_i32 = arith.constant 0 : i32
    %c0_i32_0 = arith.constant 0 : i32
    return %arg0, %c0_i32 : i32, i32
  }
}

</mosaic_0001>

<bundles_post_ra>
// kernel: tpu_custom_call.1
= control target key start
LH: loop header
LB: loop body
LE: loop exit
PB: predicated region body
PF: predicated region fallthrough
CT: control target
= control target key end

     0   :  { %10 = vsyncpa [#allocation3], 0  ;;  %s2366_s0 = inlined_call_operand.hbm [shape: f32[128,256], index: 0, kind: input, shape index: {}]   ;;  %s2367_s1 = inlined_call_operand.vmem [shape: f32[8,128], index: 1, kind: input, shape index: {}]   ;;  %s2368_s2 = inlined_call_operand.vmem [shape: f32[128,8], index: 2, kind: input, shape index: {}]   ;;  %s2369_s3 = inlined_call_operand.hbm [shape: f32[512,256], index: 3, kind: input, shape index: {}]   ;;  %s2370_s4 = inlined_call_operand.vmem [shape: f32[1,256], index: 4, kind: input, shape index: {}]   ;;  %s2371_s5 = inlined_call_operand.hbm [shape: f32[128,256], index: 5, kind: output, shape index: {}]  }
   0x1   :  { %11 = vsyncpa [#allocation6], 0 }
   0x2   :  { %12 = vsyncpa [#allocation4], 0  ;;  %s1808_s18 = smov [#allocation2]  }
   0x3   :  { %s18_s19 = sshll.u32 %s1808_s18, 4  ;;  %s19_s19 = int_to_ptr.vmem [resolvable:$true] %s18_s19 }
   0x4   :  { %s1750_s20 = scalar_lea.vmem %s19_s19, 4096  ;;  %p1755_p1 = scmp.lt.s32.totalorder %s19_s19, %s19_s19 }
   0x5   :  { %p1751_p0 = scmp.ne.s32.totalorder %s19_s19, %s1750_s20  ;;  %p1756_p2 = scmp.lt.s32.totalorder %s1750_s20, %s1750_s20 }
   0x7   :  { %p1757_p3 = por %p1756_p2, %p1755_p1 }
   0x9   :  { %p1758_p4 = pnand %p1757_p3, %p1751_p0 }
   0xb   :  { %1761 = shalt.err (!%p1758_p4)
}
   0xc   :  { %s1809_s21 = smov 256   ;;  %s1810_s22 = smov 16  }
   0xd   :  { %24 = dma.hbm_to_vmem [thread:$0]  %s2366_s0, 4096, %s19_s19, [#allocation3], %s1809_s21, %s1809_s21, %s1810_s22  }
   0xe   :  { %s1811_s25 = smov [#allocation5]  }
   0xf   :  { %s34_s26 = sshll.u32 %s1811_s25, 4  ;;  %s35_s26 = int_to_ptr.vmem [resolvable:$true] %s34_s26 }
  0x10   :  { %s1770_s27 = scalar_lea.vmem %s35_s26, 16384  ;;  %p1775_p6 = scmp.lt.s32.totalorder %s35_s26, %s35_s26 }
  0x11   :  { %p1771_p5 = scmp.ne.s32.totalorder %s35_s26, %s1770_s27  ;;  %p1776_p7 = scmp.lt.s32.totalorder %s1770_s27, %s1770_s27 }
  0x13   :  { %p1777_p8 = por %p1776_p7, %p1775_p6 }
  0x15   :  { %p1778_p9 = pnand %p1777_p8, %p1771_p5 }
  0x17   :  { %1781 = shalt.err (!%p1778_p9)
}
  0x18   :  { %40 = dma.hbm_to_vmem [thread:$0]  %s2369_s3, 16384, %s35_s26, [#allocation6], %s1809_s21, %s1809_s21, %s1810_s22  }
  0x19   :  { %1802 = dma.done.wait [#allocation3], 4096  }
  0x1a   :  { %1803 = vsyncadd [#allocation3], 4294963200 }
  0x1b   :  { %1804 = dma.done.wait [#allocation6], 16384  }
  0x1c   :  { %1805 = vsyncadd [#allocation6], 4294950912  ;;  %v1812_v0 = vmov 1.0   ;;  %v1861_v1 = vld [vmem:[#allocation2 + $0x8] sm:$0xff]  ;;  %v1864_v2 = vld [vmem:[#allocation2 + $0xd8] sm:$0xff]  ;;  %s1813_s0 = smov 1  }
  0x1d   :  { %1450 = vmatprep.subr.mxu0 %v1812_v0  ;;  %193 = vmatprep.mubr.f32.mxu0 %v1861_v1  ;;  %v1866_v3 = vld [vmem:[#allocation2 + $0xd0] sm:$0xff]  ;;  %v1868_v4 = vld [vmem:[#allocation2 + $0xf8] sm:$0xff]  ;;  %v1874_v7 = vld [vmem:[#allocation2 + $0xc8] sm:$0xff]  ;;  %vm1815_vm0 = vmmov 0   ;;  %vm354_vm1 = vcmask 7168   ;;  %vm464_vm2 = vcmask 64512  }
  0x1e   :  { %1451 = vmatpush3.msra.mxu0 %v1812_v0  ;;  %v1870_v5 = vld [vmem:[#allocation2 + $0xf0] sm:$0xff]  ;;  %v120_v6 = vmax.f32 %v1866_v3, %v1864_v2  ;;  %v1876_v8 = vld [vmem:[#allocation2 + $0xc0] sm:$0xff]  ;;  %v1880_v10 = vld [vmem:[#allocation2 + $0xe8] sm:$0xff]  ;;  %s1816_s8 = smov 127   ;;  %vm987_vm3 = vcmask 1040384  }
  0x1f   :  { %1452 = vmatprep.subr.mxu0 %v1812_v0  ;;  %v126_v9 = vmax.f32 %v1870_v5, %v1868_v4  ;;  %v1882_v11 = vld [vmem:[#allocation2 + $0xe0] sm:$0xff]  ;;  %v117_v12 = vmax.f32 %v1876_v8, %v1874_v7  ;;  %v72_v14 = vld [vmem:[#allocation2 + $0xb8] sm:$0xff]  ;;  %v71_v15 = vld [vmem:[#allocation2 + $0xb0] sm:$0xff] }
  0x20   :  { %1453 = vmatpush3.msra.mxu0 %v1812_v0  ;;  %121 = vmax.xlane.f32.xlu1 %v120_v6  ;;  %v123_v13 = vmax.f32 %v1882_v11, %v1880_v10  ;;  %v114_v16 = vmax.f32 %v71_v15, %v72_v14  ;;  %v68_v17 = vld [vmem:[#allocation2 + $0x98] sm:$0xff]  ;;  %v67_v18 = vld [vmem:[#allocation2 + $0x90] sm:$0xff]  ;;  %v1888_v20 = vld [vmem:[#allocation2] sm:$0xff] }
  0x21   :  { %1454 = vmatprep.subr.mxu0 %v1812_v0  ;;  %127 = vmax.xlane.f32.xlu0 %v126_v9  ;;  %v108_v19 = vmax.f32 %v67_v18, %v68_v17  ;;  %v1890_v21 = vld [vmem:[#allocation2 + $0x18] sm:$0xff]  ;;  %v66_v22 = vld [vmem:[#allocation2 + $0x88] sm:$0xff]  ;;  %v65_v23 = vld [vmem:[#allocation2 + $0x80] sm:$0xff] }
  0x22   :  { %1455 = vmatpush3.msra.mxu0 %v1812_v0  ;;  %v105_v24 = vmax.f32 %v65_v23, %v66_v22  ;;  %v1894_v25 = vld [vmem:[#allocation2 + $0x10] sm:$0xff]  ;;  %v54_v26 = vld [vmem:[#allocation2 + $0x28] sm:$0xff]  ;;  %v53_v27 = vld [vmem:[#allocation2 + $0x20] sm:$0xff] }
  0x23   :  { %1456 = vmatprep.subr.mxu0 %v1812_v0  ;;  %v56_v28 = vld [vmem:[#allocation2 + $0x38] sm:$0xff]  ;;  %v55_v29 = vld [vmem:[#allocation2 + $0x30] sm:$0xff]  ;;  %v58_v30 = vld [vmem:[#allocation2 + $0x48] sm:$0xff]  ;;  %v87_v46 = vmax.f32 %v53_v27, %v54_v26 }
  0x24   :  { %1457 = vmatpush3.msra.mxu0 %v1812_v0  ;;  %118 = vmax.xlane.f32.xlu1 %v117_v12  ;;  %v57_v31 = vld [vmem:[#allocation2 + $0x40] sm:$0xff]  ;;  %v60_v32 = vld [vmem:[#allocation2 + $0x58] sm:$0xff]  ;;  %v59_v33 = vld [vmem:[#allocation2 + $0x50] sm:$0xff]  ;;  %v90_v45 = vmax.f32 %v55_v29, %v56_v28 }
  0x25   :  { %1458 = vmatprep.subr.mxu0 %v1812_v0  ;;  %124 = vmax.xlane.f32.xlu0 %v123_v13  ;;  %v62_v34 = vld [vmem:[#allocation2 + $0x68] sm:$0xff]  ;;  %v61_v35 = vld [vmem:[#allocation2 + $0x60] sm:$0xff]  ;;  %v64_v36 = vld [vmem:[#allocation2 + $0x78] sm:$0xff]  ;;  %v96_v43 = vmax.f32 %v59_v33, %v60_v32  ;;  %v93_v44 = vmax.f32 %v57_v31, %v58_v30 }
  0x26   :  { %1459 = vmatpush3.msra.mxu0 %v1812_v0  ;;  %v63_v37 = vld [vmem:[#allocation2 + $0x70] sm:$0xff]  ;;  %v70_v38 = vld [vmem:[#allocation2 + $0xa8] sm:$0xff]  ;;  %v69_v39 = vld [vmem:[#allocation2 + $0xa0] sm:$0xff]  ;;  %v99_v41 = vmax.f32 %v61_v35, %v62_v34 }
  0x27   :  { %1460 = vmatprep.subr.mxu0 %v1812_v0  ;;  %v111_v40 = vmax.f32 %v69_v39, %v70_v38  ;;  %v102_v42 = vmax.f32 %v63_v37, %v64_v36 }
  0x28   :  { %1461 = vmatpush3.msra.mxu0 %v1812_v0 }
  0x29   :  { %1462 = vmatprep.subr.mxu0 %v1812_v0  ;;  %115 = vmax.xlane.f32.xlu0 %v114_v16 }
  0x2a   :  { %1463 = vmatpush3.msra.mxu0 %v1812_v0  ;;  %112 = vmax.xlane.f32.xlu1 %v111_v40 }
  0x2b   :  { %1464 = vmatprep.subr.mxu0 %v1812_v0 }
  0x2c   :  { %1465 = vmatpush3.msra.mxu0 %v1812_v0 }
  0x2d   :  { %1466 = vmatprep.subr.mxu0 %v1812_v0  ;;  %109 = vmax.xlane.f32.xlu0 %v108_v19 }
  0x2e   :  { %1467 = vmatpush3.msra.mxu0 %v1812_v0  ;;  %103 = vmax.xlane.f32.xlu1 %v102_v42 }
  0x2f   :  { %1468 = vmatprep.subr.mxu0 %v1812_v0 }
  0x30   :  { %1469 = vmatpush3.msra.mxu0 %v1812_v0 }
  0x31   :  { %1470 = vmatprep.subr.mxu0 %v1812_v0  ;;  %106 = vmax.xlane.f32.xlu0 %v105_v24 }
  0x32   :  { %1471 = vmatpush3.msra.mxu0 %v1812_v0  ;;  %94 = vmax.xlane.f32.xlu1 %v93_v44 }
  0x33   :  { %1472 = vmatprep.subr.mxu0 %v1812_v0 }
  0x34   :  { %1473 = vmatpush3.msra.mxu0 %v1812_v0 }
  0x35   :  { %1474 = vmatprep.subr.mxu0 %v1812_v0  ;;  %100 = vmax.xlane.f32.xlu0 %v99_v41 }
  0x36   :  { %1475 = vmatpush3.msra.mxu0 %v1812_v0  ;;  %88 = vmax.xlane.f32.xlu1 %v87_v46  ;;  %v81_v46 = vmax.f32 %v1888_v20, %v1861_v1 }
  0x37   :  { %1476 = vmatprep.subr.mxu0 %v1812_v0 }
  0x38   :  { %1477 = vmatpush3.msra.mxu0 %v1812_v0 }
  0x39   :  { %1478 = vmatprep.subr.mxu0 %v1812_v0  ;;  %97 = vmax.xlane.f32.xlu0 %v96_v43 }
  0x3a   :  { %1479 = vmatpush3.msra.mxu0 %v1812_v0 }
  0x3b   :  { %1480 = vmatprep.subr.mxu0 %v1812_v0 }
  0x3c   :  { %1481 = vmatpush3.msra.mxu0 %v1812_v0 }
  0x3d   :  { %194 = vmatmul.mubr.f32.vlgmr.msra.gmra.mxu0 %v1888_v20  ;;  %91 = vmax.xlane.f32.xlu0 %v90_v45  ;;  %v84_v45 = vmax.f32 %v1894_v25, %v1890_v21 }
  0x3e   :  { %198 = vmatprep.mubr.f32.mxu0 %v1890_v21 }
  0x41   :  { %199 = vmatmul.mubr.f32.gmra.mxu0 %v1894_v25 }
  0x42   :  { %203 = vmatprep.mubr.f32.mxu0 %v54_v26 }
  0x45   :  { %204 = vmatmul.mubr.f32.gmra.mxu0 %v53_v27 }
  0x46   :  { %208 = vmatprep.mubr.f32.mxu0 %v56_v28 }
  0x49   :  { %209 = vmatmul.mubr.f32.gmra.mxu0 %v55_v29 }
  0x4a   :  { %213 = vmatprep.mubr.f32.mxu0 %v58_v30 }
  0x4d   :  { %214 = vmatmul.mubr.f32.gmra.mxu0 %v57_v31 }
  0x4e   :  { %218 = vmatprep.mubr.f32.mxu0 %v60_v32 }
  0x51   :  { %219 = vmatmul.mubr.f32.gmra.mxu0 %v59_v33  ;;  %v1814_v33 = vmov 0.0  }
  0x52   :  { %223 = vmatprep.mubr.f32.mxu0 %v62_v34  ;;  %1564 = vmatprep.subr.mxu1 %v1814_v33 }
  0x53   :  { %1596 = vmatprep.mubr.msk.f32.mxu1 %vm1815_vm0, %v1814_v33 }
  0x55   :  { %224 = vmatmul.mubr.f32.gmra.mxu0 %v61_v35 }
  0x56   :  { %228 = vmatprep.mubr.f32.mxu0 %v64_v36 }
  0x59   :  { %229 = vmatmul.mubr.f32.gmra.mxu0 %v63_v37 }
  0x5a   :  { %233 = vmatprep.mubr.f32.mxu0 %v66_v22 }
  0x5d   :  { %234 = vmatmul.mubr.f32.gmra.mxu0 %v65_v23 }
  0x5e   :  { %238 = vmatprep.mubr.f32.mxu0 %v68_v17 }
  0x61   :  { %239 = vmatmul.mubr.f32.gmra.mxu0 %v67_v18 }
  0x62   :  { %243 = vmatprep.mubr.f32.mxu0 %v70_v38 }
  0x65   :  { %244 = vmatmul.mubr.f32.gmra.mxu0 %v69_v39 }
  0x66   :  { %248 = vmatprep.mubr.f32.mxu0 %v72_v14 }
  0x69   :  { %249 = vmatmul.mubr.f32.gmra.mxu0 %v71_v15 }
  0x6a   :  { %253 = vmatprep.mubr.f32.mxu0 %v1874_v7 }
  0x6d   :  { %254 = vmatmul.mubr.f32.gmra.mxu0 %v1876_v8 }
  0x6e   :  { %258 = vmatprep.mubr.f32.mxu0 %v1864_v2 }
  0x71   :  { %259 = vmatmul.mubr.f32.gmra.mxu0 %v1866_v3 }
  0x72   :  { %263 = vmatprep.mubr.f32.mxu0 %v1880_v10 }
  0x75   :  { %264 = vmatmul.mubr.f32.gmra.mxu0 %v1882_v11 }
  0x76   :  { %268 = vmatprep.mubr.f32.mxu0 %v1868_v4 }
  0x79   :  { %269 = vmatmul.mubr.f32.gmra.mxu0 %v1870_v5 }
  0xa9   :  { %v122_v25 = vpop.xlane.xlu1 %121 }
  0xfd   :  { %v1482_v47 = vpop.f32.mrf.mxu0 }
  0xff   :  { %v1483_v48 = vpop.f32.mrf.mxu0 }
 0x100   :  { %v1905_v49 = vadd.f32 %v1483_v48, %v1482_v47  ;;  %v128_v47 = vpop.xlane.xlu0 %127 }
 0x101   :  { %v1485_v50 = vpop.f32.mrf.mxu0 }
 0x103   :  { %v1486_v51 = vpop.f32.mrf.mxu0 }
 0x104   :  { %v1907_v52 = vadd.f32 %v1486_v51, %v1485_v50 }
 0x105   :  { %v1488_v53 = vpop.f32.mrf.mxu0 }
 0x106   :  { %v275_v20 = vmul.f32 0.00390625, %v1907_v52 }
 0x107   :  { %v1489_v54 = vpop.f32.mrf.mxu0 }
 0x108   :  { %v1909_v55 = vadd.f32 %v1489_v54, %v1488_v53  ;;  %v125_v53 = vpop.xlane.xlu0 %124 }
 0x109   :  { %v1491_v56 = vpop.f32.mrf.mxu0 }
 0x10a   :  { %v276_v50 = vmul.f32 0.00390625, %v1909_v55 }
 0x10b   :  { %v1492_v57 = vpop.f32.mrf.mxu0 }
 0x10c   :  { %v1911_v58 = vadd.f32 %v1492_v57, %v1491_v56  ;;  %v116_v21 = vpop.xlane.xlu0 %115  ;;  %v274_v56 = vmul.f32 0.00390625, %v1905_v49  ;;  %v119_v57 = vpop.xlane.xlu1 %118 }
 0x10d   :  { %v1494_v59 = vpop.f32.mrf.mxu0 }
 0x10e   :  { %v277_v1 = vmul.f32 0.00390625, %v1911_v58 }
 0x10f   :  { %v1495_v60 = vpop.f32.mrf.mxu0 }
 0x110   :  { %v1913_v61 = vadd.f32 %v1495_v60, %v1494_v59  ;;  %v110_v55 = vpop.xlane.xlu0 %109  ;;  %v113_v60 = vpop.xlane.xlu1 %112 }
 0x111   :  { %v1497_v62 = vpop.f32.mrf.mxu0 }
 0x112   :  { %v278_v54 = vmul.f32 0.00390625, %v1913_v61 }
 0x113   :  { %v1498_v63 = vpop.f32.mrf.mxu0 }
 0x114   :  { %v1499_v0 = vadd.f32 %v1498_v63, %v1497_v62  ;;  %v107_v59 = vpop.xlane.xlu0 %106  ;;  %v104_v58 = vpop.xlane.xlu1 %103 }
 0x115   :  { %v1500_v2 = vpop.f32.mrf.mxu0 }
 0x116   :  { %v279_v51 = vmul.f32 0.00390625, %v1499_v0 }
 0x117   :  { %v1501_v3 = vpop.f32.mrf.mxu0 }
 0x118   :  { %v1502_v4 = vadd.f32 %v1501_v3, %v1500_v2  ;;  %v101_v61 = vpop.xlane.xlu0 %100  ;;  %v95_v63 = vpop.xlane.xlu1 %94 }
 0x119   :  { %v1503_v5 = vpop.f32.mrf.mxu0 }
 0x11a   :  { %v280_v48 = vmul.f32 0.00390625, %v1502_v4 }
 0x11b   :  { %v1504_v6 = vpop.f32.mrf.mxu0 }
 0x11c   :  { %v1505_v30 = vadd.f32 %v1504_v6, %v1503_v5  ;;  %v98_v62 = vpop.xlane.xlu0 %97  ;;  %v89_v2 = vpop.xlane.xlu1 %88 }
 0x11d   :  { %v1506_v7 = vpop.f32.mrf.mxu0 }
 0x11e   :  { %v281_v36 = vmul.f32 0.00390625, %v1505_v30 }
 0x11f   :  { %v1507_v8 = vpop.f32.mrf.mxu0 }
 0x120   :  { %v1508_v9 = vadd.f32 %v1507_v8, %v1506_v7  ;;  %v92_v0 = vpop.xlane.xlu0 %91 }
 0x121   :  { %v1509_v10 = vpop.f32.mrf.mxu0 }
 0x122   :  { %v282_v11 = vmul.f32 0.00390625, %v1508_v9 }
 0x123   :  { %v1510_v12 = vpop.f32.mrf.mxu0 }
 0x124   :  { %v1511_v13 = vadd.f32 %v1510_v12, %v1509_v10  ;;  %322 = vrot.lane.b32.xlu0 %v282_v11, %s1813_s0 }
 0x125   :  { %v1512_v14 = vpop.f32.mrf.mxu0 }
 0x126   :  { %v283_v15 = vmul.f32 0.00390625, %v1511_v13 }
 0x127   :  { %v1513_v16 = vpop.f32.mrf.mxu0 }
 0x128   :  { %v1514_v17 = vadd.f32 %v1513_v16, %v1512_v14  ;;  %324 = vrot.lane.b32.xlu1 %v283_v15, %s1813_s0 }
 0x129   :  { %v1515_v18 = vpop.f32.mrf.mxu0 }
 0x12a   :  { %v284_v19 = vmul.f32 0.00390625, %v1514_v17 }
 0x12b   :  { %v1516_v22 = vpop.f32.mrf.mxu0 }
 0x12c   :  { %v1517_v23 = vadd.f32 %v1516_v22, %v1515_v18  ;;  %326 = vrot.lane.b32.xlu0 %v284_v19, %s1813_s0 }
 0x12d   :  { %v1518_v24 = vpop.f32.mrf.mxu0 }
 0x12e   :  { %v285_v26 = vmul.f32 0.00390625, %v1517_v23 }
 0x12f   :  { %v1519_v27 = vpop.f32.mrf.mxu0 }
 0x130   :  { %v1520_v28 = vadd.f32 %v1519_v27, %v1518_v24  ;;  %328 = vrot.lane.b32.xlu0 %v285_v26, %s1813_s0 }
 0x131   :  { %v1521_v29 = vpop.f32.mrf.mxu0 }
 0x132   :  { %v286_v31 = vmul.f32 0.00390625, %v1520_v28 }
 0x133   :  { %v1522_v32 = vpop.f32.mrf.mxu0 }
 0x134   :  { %v1523_v34 = vadd.f32 %v1522_v32, %v1521_v29  ;;  %330 = vrot.lane.b32.xlu1 %v286_v31, %s1813_s0 }
 0x135   :  { %v1524_v35 = vpop.f32.mrf.mxu0 }
 0x136   :  { %v287_v37 = vmul.f32 0.00390625, %v1523_v34 }
 0x137   :  { %v1525_v38 = vpop.f32.mrf.mxu0 }
 0x138   :  { %v1526_v39 = vadd.f32 %v1525_v38, %v1524_v35  ;;  %332 = vrot.lane.b32.xlu0 %v287_v37, %s1813_s0  ;;  %320 = vrot.lane.b32.xlu1 %v281_v36, %s1813_s0  ;;  %v371_v38 = vld [vmem:[%s2367_s1] sm:$0xff] }
 0x139   :  { %v1527_v40 = vpop.f32.mrf.mxu0 }
 0x13a   :  { %v288_v41 = vmul.f32 0.00390625, %v1526_v39 }
 0x13b   :  { %v1528_v42 = vpop.f32.mrf.mxu0 }
 0x13c   :  { %v1529_v43 = vadd.f32 %v1528_v42, %v1527_v40  ;;  %334 = vrot.lane.b32.xlu0 %v288_v41, %s1813_s0  ;;  %v443_v40 = vld [vmem:[%s2368_s2] sm:$0xff] }
 0x13e   :  { %v289_v44 = vmul.f32 0.00390625, %v1529_v43 }
 0x140   :  { %336 = vrot.lane.b32.xlu1 %v289_v44, %s1813_s0 }
 0x15b   :  { %85 = vmax.xlane.f32.xlu0 %v84_v45  ;;  %v444_v45 = vld [vmem:[%s2368_s2 + $0x8] sm:$0xff] }
 0x164   :  { %82 = vmax.xlane.f32.xlu1 %v81_v46  ;;  %v445_v46 = vld [vmem:[%s2368_s2 + $0x10] sm:$0xff] }
 0x171   :  { %318 = vrot.lane.b32.xlu0 %v280_v48, %s1813_s0  ;;  %v447_v48 = vld [vmem:[%s2368_s2 + $0x20] sm:$0xff] }
 0x175   :  { %316 = vrot.lane.b32.xlu0 %v279_v51, %s1813_s0  ;;  %310 = vrot.lane.b32.xlu1 %v276_v50, %s1813_s0  ;;  %v448_v50 = vld [vmem:[%s2368_s2 + $0x28] sm:$0xff]  ;;  %v449_v51 = vld [vmem:[%s2368_s2 + $0x30] sm:$0xff] }
 0x179   :  { %314 = vrot.lane.b32.xlu0 %v278_v54, %s1813_s0  ;;  %v451_v54 = vld [vmem:[%s2368_s2 + $0x40] sm:$0xff] }
 0x17d   :  { %312 = vrot.lane.b32.xlu0 %v277_v1, %s1813_s0  ;;  %v453_v1 = vld [vmem:[%s2368_s2 + $0x50] sm:$0xff] }
 0x181   :  { %308 = vrot.lane.b32.xlu0 %v275_v20, %s1813_s0  ;;  %v454_v20 = vld [vmem:[%s2368_s2 + $0x58] sm:$0xff] }
 0x185   :  { %306 = vrot.lane.b32.xlu0 %v274_v56, %s1813_s0  ;;  %v457_v56 = vld [vmem:[%s2368_s2 + $0x70] sm:$0xff] }
 0x196   :  { %v323_v3 = vpop.permute.xlu0 %322 }
 0x197   :  { %v363_v17 = vsel %vm354_vm1, %v107_v59, %v323_v3  ;;  %v1817_v59 = vmov 0  }
 0x198   :  { %1636 = vset.pattern.permute.xlu1 %v1817_v59  ;;  %1637 = vset.pattern.permute.xlu0 %v1817_v59  ;;  %v1081_v59 = vld [vmem:[#allocation5 + $0x2c8] sm:$0xff] }
 0x19a   :  { %v325_v52 = vpop.permute.xlu1 %324 }
 0x19b   :  { %v364_v16 = vsel %vm354_vm1, %v110_v55, %v325_v52  ;;  %v456_v55 = vld [vmem:[%s2368_s2 + $0x68] sm:$0xff] }
 0x19e   :  { %v327_v4 = vpop.permute.xlu0 %326 }
 0x19f   :  { %v365_v15 = vsel %vm354_vm1, %v113_v60, %v327_v4  ;;  %v1023_v60 = vld [vmem:[#allocation5 + $0xf8] sm:$0xff] }
 0x1a0   :  { %1132 = vmatprep.subr.mxu0 %v1023_v60  ;;  %v1014_v60 = vld [vmem:[#allocation5 + $0xb0] sm:$0xff] }
 0x1a2   :  { %v329_v5 = vpop.permute.xlu0 %328 }
 0x1a3   :  { %v366_v14 = vsel %vm354_vm1, %v116_v21, %v329_v5  ;;  %v452_v21 = vld [vmem:[%s2368_s2 + $0x48] sm:$0xff] }
 0x1a6   :  { %v331_v6 = vpop.permute.xlu1 %330 }
 0x1a7   :  { %v367_v13 = vsel %vm354_vm1, %v119_v57, %v331_v6  ;;  %v458_v57 = vld [vmem:[%s2368_s2 + $0x78] sm:$0xff] }
 0x1aa   :  { %v333_v7 = vpop.permute.xlu0 %332  ;;  %v321_v8 = vpop.permute.xlu1 %320 }
 0x1ab   :  { %v368_v12 = vsel %vm354_vm1, %v122_v25, %v333_v7  ;;  %v362_v18 = vsel %vm354_vm1, %v104_v58, %v321_v8  ;;  %v455_v25 = vld [vmem:[%s2368_s2 + $0x60] sm:$0xff] }
 0x1ae   :  { %v335_v9 = vpop.permute.xlu0 %334 }
 0x1af   :  { %v369_v11 = vsel %vm354_vm1, %v125_v53, %v335_v9  ;;  %v450_v53 = vld [vmem:[%s2368_s2 + $0x38] sm:$0xff] }
 0x1b2   :  { %v337_v49 = vpop.permute.xlu1 %336 }
 0x1b3   :  { %v370_v10 = vsel %vm354_vm1, %v128_v47, %v337_v49  ;;  %v446_v47 = vld [vmem:[%s2368_s2 + $0x18] sm:$0xff] }
 0x1b4   :  { %1565 = vmatpush3.msra.mxu1 %v370_v10 }
 0x1b5   :  { %1566 = vmatprep.subr.mxu1 %v1814_v33 }
 0x1b6   :  { %1567 = vmatpush3.msra.mxu1 %v369_v11 }
 0x1b7   :  { %1568 = vmatprep.subr.mxu1 %v1814_v33 }
 0x1b8   :  { %1569 = vmatpush3.msra.mxu1 %v368_v12 }
 0x1b9   :  { %1570 = vmatprep.subr.mxu1 %v1814_v33 }
 0x1ba   :  { %1571 = vmatpush3.msra.mxu1 %v367_v13 }
 0x1bb   :  { %1572 = vmatprep.subr.mxu1 %v1814_v33 }
 0x1bc   :  { %1573 = vmatpush3.msra.mxu1 %v366_v14 }
 0x1bd   :  { %1574 = vmatprep.subr.mxu1 %v1814_v33 }
 0x1be   :  { %1575 = vmatpush3.msra.mxu1 %v365_v15 }
 0x1bf   :  { %1576 = vmatprep.subr.mxu1 %v1814_v33 }
 0x1c0   :  { %1577 = vmatpush3.msra.mxu1 %v364_v16 }
 0x1c1   :  { %1578 = vmatprep.subr.mxu1 %v1814_v33 }
 0x1c2   :  { %1579 = vmatpush3.msra.mxu1 %v363_v17 }
 0x1c3   :  { %1580 = vmatprep.subr.mxu1 %v1814_v33 }
 0x1c4   :  { %1581 = vmatpush3.msra.mxu1 %v362_v18 }
 0x1c5   :  { %1582 = vmatprep.subr.mxu1 %v1814_v33 }
 0x1e4   :  { %v86_v19 = vpop.xlane.xlu0 %85 }
 0x1e8   :  { %v319_v22 = vpop.permute.xlu0 %318 }
 0x1e9   :  { %v361_v23 = vsel %vm354_vm1, %v101_v61, %v319_v22  ;;  %v1022_v61 = vld [vmem:[#allocation5 + $0xf0] sm:$0xff] }
 0x1ea   :  { %1583 = vmatpush3.msra.mxu1 %v361_v23  ;;  %1133 = vmatpush1.msra.mxu0 %v1022_v61 }
 0x1eb   :  { %1584 = vmatprep.subr.mxu1 %v1814_v33 }
 0x1ec   :  { %v317_v24 = vpop.permute.xlu0 %316 }
 0x1ed   :  { %v360_v26 = vsel %vm354_vm1, %v98_v62, %v317_v24  ;;  %v83_v27 = vpop.xlane.xlu1 %82 }
 0x1ee   :  { %1585 = vmatpush3.msra.mxu1 %v360_v26 }
 0x1ef   :  { %1586 = vmatprep.subr.mxu1 %v1814_v33 }
 0x1f0   :  { %v315_v28 = vpop.permute.xlu0 %314 }
 0x1f1   :  { %v359_v29 = vsel %vm354_vm1, %v95_v63, %v315_v28  ;;  %v311_v30 = vpop.permute.xlu1 %310 }
 0x1f2   :  { %1587 = vmatpush3.msra.mxu1 %v359_v29  ;;  %v357_v34 = vsel %vm354_vm1, %v89_v2, %v311_v30 }
 0x1f3   :  { %1588 = vmatprep.subr.mxu1 %v1814_v33 }
 0x1f4   :  { %v313_v31 = vpop.permute.xlu0 %312 }
 0x1f5   :  { %v358_v32 = vsel %vm354_vm1, %v92_v0, %v313_v31 }
 0x1f6   :  { %1589 = vmatpush3.msra.mxu1 %v358_v32 }
 0x1f7   :  { %1590 = vmatprep.subr.mxu1 %v1814_v33 }
 0x1f8   :  { %v309_v35 = vpop.permute.xlu0 %308  ;;  %1591 = vmatpush3.msra.mxu1 %v357_v34 }
 0x1f9   :  { %1592 = vmatprep.subr.mxu1 %v1814_v33  ;;  %v356_v36 = vsel %vm354_vm1, %v86_v19, %v309_v35 }
 0x1fa   :  { %1593 = vmatpush3.msra.mxu1 %v356_v36 }
 0x1fb   :  { %1594 = vmatprep.subr.mxu1 %v1814_v33 }
 0x1fc   :  { %v307_v37 = vpop.permute.xlu0 %306 }
 0x1fd   :  { %v355_v39 = vsel %vm354_vm1, %v83_v27, %v307_v37 }
 0x1fe   :  { %1595 = vmatpush3.msra.mxu1 %v355_v39  ;;  %v1087_v39 = vld [vmem:[#allocation5 + $0x2f8] sm:$0xff] }
 0x1ff   :  { %1597 = vmatmul.mubr.f32.vlgmr.msra.gmra.mxu1 %v371_v38  ;;  %v1021_v38 = vld [vmem:[#allocation5 + $0xe8] sm:$0xff] }
 0x200   :  { %1601 = vmatprep.mubr.msk.f32.mxu1 %vm464_vm2, %v443_v40  ;;  %v1020_v40 = vld [vmem:[#allocation5 + $0xe0] sm:$0xff]  ;;  %1134 = vmatprep.subr.mxu0 %v1021_v38 }
 0x201   :  { %1135 = vmatpush1.msra.mxu0 %v1020_v40 }
 0x2bf   :  { %v438_v41 = vpop.f32.mrf.mxu1 }
 0x2c0   :  { %v442_v42 = vmax.f32 %v438_v41, 0.0 }
 0x2c1   :  { %v1598_v43 = vpop.f32.mrf.mxu1 }
 0x2c2   :  { %460 = vrot.lane.b32.xlu0 %v442_v42, %s1816_s8  ;;  %v1086_v43 = vld [vmem:[#allocation5 + $0x2f0] sm:$0xff] }
 0x334   :  { %v461_v33 = vpop.permute.xlu0 %460 }
 0x335   :  { %v463_v44 = vadd.f32 %v461_v33, %v442_v42  ;;  %v1019_v33 = vld [vmem:[#allocation5 + $0xd8] sm:$0xff] }
 0x336   :  { %1136 = vmatprep.subr.mxu0 %v1019_v33 }
 0x337   :  { %1599 = vmatprep.subr.mxu1 %v463_v44 }
 0x338   :  { %1600 = vmatpush3.msra.mxu1 %v463_v44  ;;  %v1085_v44 = vld [vmem:[#allocation5 + $0x2e8] sm:$0xff] }
 0x339   :  { %1602 = vmatmul.mubr.msk.f32.vlgmr.msra.gmra.mxu1 %vm464_vm2, %v444_v45  ;;  %1203 = vmatprep.subr.mxu1 %v1087_v39  ;;  %v1002_v39 = vld [vmem:[#allocation5 + $0x50] sm:$0xff] }
 0x33a   :  { %1604 = vmatprep.mubr.msk.f32.mxu1 %vm464_vm2, %v445_v46  ;;  %1204 = vmatpush1.msra.mxu1 %v1086_v43  ;;  %v1001_v43 = vld [vmem:[#allocation5 + $0x48] sm:$0xff] }
 0x33b   :  { %1205 = vmatprep.subr.mxu1 %v1085_v44  ;;  %v1067_v44 = vld [vmem:[#allocation5 + $0x258] sm:$0xff] }
 0x33d   :  { %1605 = vmatmul.mubr.msk.f32.gmra.mxu1 %vm464_vm2, %v446_v47  ;;  %v1018_v47 = vld [vmem:[#allocation5 + $0xd0] sm:$0xff] }
 0x33e   :  { %1607 = vmatprep.mubr.msk.f32.mxu1 %vm464_vm2, %v447_v48  ;;  %v1084_v48 = vld [vmem:[#allocation5 + $0x2e0] sm:$0xff]  ;;  %1137 = vmatpush1.msra.mxu0 %v1018_v47  ;;  %v1066_v47 = vld [vmem:[#allocation5 + $0x250] sm:$0xff] }
 0x33f   :  { %1206 = vmatpush1.msra.mxu1 %v1084_v48 }
 0x341   :  { %1608 = vmatmul.mubr.msk.f32.gmra.mxu1 %vm464_vm2, %v448_v50 }
 0x342   :  { %1610 = vmatprep.mubr.msk.f32.mxu1 %vm464_vm2, %v449_v51 }
 0x345   :  { %1611 = vmatmul.mubr.msk.f32.gmra.mxu1 %vm464_vm2, %v450_v53  ;;  %v1017_v53 = vld [vmem:[#allocation5 + $0xc8] sm:$0xff] }
 0x346   :  { %1613 = vmatprep.mubr.msk.f32.mxu1 %vm464_vm2, %v451_v54  ;;  %v1083_v54 = vld [vmem:[#allocation5 + $0x2d8] sm:$0xff]  ;;  %1138 = vmatprep.subr.mxu0 %v1017_v53  ;;  %v1065_v53 = vld [vmem:[#allocation5 + $0x248] sm:$0xff] }
 0x347   :  { %1207 = vmatprep.subr.mxu1 %v1083_v54  ;;  %v998_v54 = vld [vmem:[#allocation5 + $0x30] sm:$0xff] }
 0x349   :  { %1614 = vmatmul.mubr.msk.f32.gmra.mxu1 %vm464_vm2, %v452_v21 }
 0x34a   :  { %1616 = vmatprep.mubr.msk.f32.mxu1 %vm464_vm2, %v453_v1 }
 0x34d   :  { %1617 = vmatmul.mubr.msk.f32.gmra.mxu1 %vm464_vm2, %v454_v20  ;;  %v1016_v20 = vld [vmem:[#allocation5 + $0xc0] sm:$0xff] }
 0x34e   :  { %1619 = vmatprep.mubr.msk.f32.mxu1 %vm464_vm2, %v455_v25  ;;  %v1082_v25 = vld [vmem:[#allocation5 + $0x2d0] sm:$0xff]  ;;  %1139 = vmatpush1.msra.mxu0 %v1016_v20  ;;  %v997_v20 = vld [vmem:[#allocation5 + $0x28] sm:$0xff] }
 0x34f   :  { %1208 = vmatpush1.msra.mxu1 %v1082_v25  ;;  %v1063_v25 = vld [vmem:[#allocation5 + $0x238] sm:$0xff] }
 0x350   :  { %1209 = vmatprep.subr.mxu1 %v1081_v59  ;;  %v995_v59 = vld [vmem:[#allocation5 + $0x18] sm:$0xff] }
 0x351   :  { %1620 = vmatmul.mubr.msk.f32.gmra.mxu1 %vm464_vm2, %v456_v55 }
 0x352   :  { %1622 = vmatprep.mubr.msk.f32.mxu1 %vm464_vm2, %v457_v56 }
 0x355   :  { %1623 = vmatmul.mubr.msk.f32.gmra.mxu1 %vm464_vm2, %v458_v57  ;;  %v1015_v57 = vld [vmem:[#allocation5 + $0xb8] sm:$0xff] }
 0x356   :  { %1140 = vmatprep.subr.mxu0 %v1015_v57 }
 0x357   :  { %1141 = vmatpush1.msra.mxu0 %v1014_v60  ;;  %v1061_v60 = vld [vmem:[#allocation5 + $0x228] sm:$0xff] }
 0x3f9   :  { %v1603_v58 = vpop.f32.mrf.mxu1 }
 0x3fa   :  { %v1433_v62 = vmul.f32 -1.442695, %v1603_v58 }
 0x3fb   :  { %v579_v63 = vpop.f32.mrf.mxu1 }
 0x3fc   :  { %1638 = vpow2.f32 %v1433_v62  ;;  %v1432_v0 = vmul.f32 -1.442695, %v579_v63  ;;  %v1080_v62 = vld [vmem:[#allocation5 + $0x2c0] sm:$0xff] }
 0x3fd   :  { %v1606_v2 = vpop.f32.mrf.mxu1  ;;  %1210 = vmatpush1.msra.mxu1 %v1080_v62 }
 0x3fe   :  { %1640 = vpow2.f32 %v1432_v0  ;;  %v1435_v3 = vmul.f32 -1.442695, %v1606_v2  ;;  %v1013_v0 = vld [vmem:[#allocation5 + $0xa8] sm:$0xff]  ;;  %v1079_v2 = vld [vmem:[#allocation5 + $0x2b8] sm:$0xff] }
 0x3ff   :  { %v589_v4 = vpop.f32.mrf.mxu1  ;;  %1142 = vmatprep.subr.mxu0 %v1013_v0  ;;  %1211 = vmatprep.subr.mxu1 %v1079_v2  ;;  %v993_v0 = vld [vmem:[#allocation5 + $0x8] sm:$0xff] }
 0x400   :  { %1642 = vpow2.f32 %v1435_v3  ;;  %v1434_v52 = vmul.f32 -1.442695, %v589_v4 }
 0x401   :  { %v1609_v5 = vpop.f32.mrf.mxu1 }
 0x402   :  { %1644 = vpow2.f32 %v1434_v52  ;;  %v1437_v9 = vmul.f32 -1.442695, %v1609_v5  ;;  %v1012_v52 = vld [vmem:[#allocation5 + $0xa0] sm:$0xff]  ;;  %v1078_v5 = vld [vmem:[#allocation5 + $0x2b0] sm:$0xff] }
 0x403   :  { %v599_v6 = vpop.f32.mrf.mxu1  ;;  %1143 = vmatpush1.msra.mxu0 %v1012_v52  ;;  %1212 = vmatpush1.msra.mxu1 %v1078_v5  ;;  %v1058_v52 = vld [vmem:[#allocation5 + $0x210] sm:$0xff]  ;;  %v1055_v5 = vld [vmem:[#allocation5 + $0x1f8] sm:$0xff] }
 0x404   :  { %v1436_v7 = vmul.f32 -1.442695, %v599_v6 }
 0x405   :  { %v1612_v8 = vpop.f32.mrf.mxu1 }
 0x406   :  { %1646 = vpow2.f32 %v1436_v7  ;;  %v1439_v32 = vmul.f32 -1.442695, %v1612_v8  ;;  %v1011_v7 = vld [vmem:[#allocation5 + $0x98] sm:$0xff]  ;;  %v1077_v8 = vld [vmem:[#allocation5 + $0x2a8] sm:$0xff] }
 0x407   :  { %v2040_v49 = vpop.f32.mrf.mxu1  ;;  %1648 = vpow2.f32 %v1437_v9  ;;  %1144 = vmatprep.subr.mxu0 %v1011_v7  ;;  %1213 = vmatprep.subr.mxu1 %v1077_v8  ;;  %v1054_v7 = vld [vmem:[#allocation5 + $0x1f0] sm:$0xff] }
 0x408   :  { %v1438_v3 = vmul.f32 -1.442695, %v2040_v49  ;;  %v1009_v49 = vld [vmem:[#allocation5 + $0x88] sm:$0xff] }
 0x409   :  { %v1639_v10 = vpop.eup %1638  ;;  %v1615_v11 = vpop.f32.mrf.mxu1 }
 0x40a   :  { %v707_v12 = vadd.f32 1.0, %v1639_v10  ;;  %v1441_v13 = vmul.f32 -1.442695, %v1615_v11  ;;  %v1010_v10 = vld [vmem:[#allocation5 + $0x90] sm:$0xff]  ;;  %v1076_v11 = vld [vmem:[#allocation5 + $0x2a0] sm:$0xff] }
 0x40b   :  { %v1641_v14 = vpop.eup %1640  ;;  %v619_v15 = vpop.f32.mrf.mxu1  ;;  %1145 = vmatpush1.msra.mxu0 %v1010_v10  ;;  %1214 = vmatpush1.msra.mxu1 %v1076_v11  ;;  %v1053_v10 = vld [vmem:[#allocation5 + $0x1e8] sm:$0xff]  ;;  %v1119_v11 = vld [vmem:[#allocation5 + $0x3f8] sm:$0xff] }
 0x40c   :  { %1650 = vrcp.f32 %v707_v12  ;;  %v706_v16 = vadd.f32 1.0, %v1641_v14  ;;  %v1440_v17 = vmul.f32 -1.442695, %v619_v15  ;;  %v1008_v15 = vld [vmem:[#allocation5 + $0x80] sm:$0xff]  ;;  %1146 = vmatprep.subr.mxu0 %v1009_v49 }
 0x40d   :  { %v1643_v18 = vpop.eup %1642  ;;  %1652 = vpow2.f32 %v1441_v13  ;;  %v1618_v19 = vpop.f32.mrf.mxu1  ;;  %v1075_v13 = vld [vmem:[#allocation5 + $0x298] sm:$0xff]  ;;  %1147 = vmatpush1.msra.mxu0 %v1008_v15  ;;  %v1052_v49 = vld [vmem:[#allocation5 + $0x1e0] sm:$0xff]  ;;  %v1117_v15 = vld [vmem:[#allocation5 + $0x3e8] sm:$0xff] }
 0x40e   :  { %1654 = vrcp.f32 %v706_v16  ;;  %v709_v22 = vadd.f32 1.0, %v1643_v18  ;;  %v1443_v23 = vmul.f32 -1.442695, %v1618_v19  ;;  %v1074_v18 = vld [vmem:[#allocation5 + $0x290] sm:$0xff]  ;;  %v1007_v19 = vld [vmem:[#allocation5 + $0x78] sm:$0xff]  ;;  %1215 = vmatprep.subr.mxu1 %v1075_v13 }
 0x40f   :  { %v1645_v24 = vpop.eup %1644  ;;  %1656 = vpow2.f32 %v1440_v17  ;;  %v629_v26 = vpop.f32.mrf.mxu1  ;;  %1216 = vmatpush1.msra.mxu1 %v1074_v18  ;;  %1148 = vmatprep.subr.mxu0 %v1007_v19  ;;  %v1118_v13 = vld [vmem:[#allocation5 + $0x3f0] sm:$0xff]  ;;  %v1049_v18 = vld [vmem:[#allocation5 + $0x1c8] sm:$0xff] }
 0x410   :  { %1658 = vrcp.f32 %v709_v22  ;;  %v708_v27 = vadd.f32 1.0, %v1645_v24  ;;  %v1442_v28 = vmul.f32 -1.442695, %v629_v26  ;;  %v1006_v24 = vld [vmem:[#allocation5 + $0x70] sm:$0xff] }
 0x411   :  { %1660 = vpow2.f32 %v1443_v23  ;;  %v1621_v29 = vpop.f32.mrf.mxu1  ;;  %v1073_v23 = vld [vmem:[#allocation5 + $0x288] sm:$0xff]  ;;  %1149 = vmatpush1.msra.mxu0 %v1006_v24  ;;  %v1114_v24 = vld [vmem:[#allocation5 + $0x3d0] sm:$0xff] }
 0x412   :  { %v1445_v30 = vmul.f32 -1.442695, %v1621_v29  ;;  %1662 = vpow2.f32 %v1442_v28  ;;  %v1005_v28 = vld [vmem:[#allocation5 + $0x68] sm:$0xff]  ;;  %1217 = vmatprep.subr.mxu1 %v1073_v23  ;;  %v1048_v23 = vld [vmem:[#allocation5 + $0x1c0] sm:$0xff] }
 0x413   :  { %v1647_v31 = vpop.eup %1646  ;;  %v639_v34 = vpop.f32.mrf.mxu1  ;;  %1664 = vrcp.f32 %v708_v27  ;;  %v1072_v27 = vld [vmem:[#allocation5 + $0x280] sm:$0xff]  ;;  %1150 = vmatprep.subr.mxu0 %v1005_v28  ;;  %v1046_v28 = vld [vmem:[#allocation5 + $0x1b0] sm:$0xff] }
 0x414   :  { %v710_v35 = vadd.f32 1.0, %v1647_v31  ;;  %1666 = vpow2.f32 %v1445_v30  ;;  %v1444_v41 = vmul.f32 -1.442695, %v639_v34  ;;  %v1649_v45 = vpop.eup %1648  ;;  %v1071_v30 = vld [vmem:[#allocation5 + $0x278] sm:$0xff]  ;;  %v1004_v31 = vld [vmem:[#allocation5 + $0x60] sm:$0xff]  ;;  %v1070_v34 = vld [vmem:[#allocation5 + $0x270] sm:$0xff]  ;;  %1218 = vmatpush1.msra.mxu1 %v1072_v27 }
 0x415   :  { %v1624_v36 = vpop.f32.mrf.mxu1  ;;  %1668 = vpow2.f32 %v1439_v32  ;;  %v711_v56 = vadd.f32 1.0, %v1649_v45  ;;  %1219 = vmatprep.subr.mxu1 %v1071_v30  ;;  %1151 = vmatpush1.msra.mxu0 %v1004_v31  ;;  %v1113_v27 = vld [vmem:[#allocation5 + $0x3c8] sm:$0xff] }
 0x416   :  { %v1447_v37 = vmul.f32 -1.442695, %v1624_v36  ;;  %1670 = vrcp.f32 %v710_v35  ;;  %v1003_v36 = vld [vmem:[#allocation5 + $0x58] sm:$0xff]  ;;  %1220 = vmatpush1.msra.mxu1 %v1070_v34  ;;  %v1045_v31 = vld [vmem:[#allocation5 + $0x1a8] sm:$0xff]  ;;  %v1044_v34 = vld [vmem:[#allocation5 + $0x1a0] sm:$0xff] }
 0x417   :  { %v649_v42 = vpop.f32.mrf.mxu1  ;;  %1152 = vmatprep.subr.mxu0 %v1003_v36  ;;  %v1043_v36 = vld [vmem:[#allocation5 + $0x198] sm:$0xff] }
 0x418   :  { %1672 = vpow2.f32 %v1447_v37  ;;  %v1446_v51 = vmul.f32 -1.442695, %v649_v42  ;;  %v1069_v37 = vld [vmem:[#allocation5 + $0x268] sm:$0xff]  ;;  %v1068_v42 = vld [vmem:[#allocation5 + $0x260] sm:$0xff]  ;;  %1153 = vmatpush1.msra.mxu0 %v1002_v39 }
 0x419   :  { %v1651_v46 = vpop.eup %1650  ;;  %1674 = vpow2.f32 %v1444_v41  ;;  %1221 = vmatprep.subr.mxu1 %v1069_v37  ;;  %1154 = vmatprep.subr.mxu0 %v1001_v43  ;;  %v1109_v37 = vld [vmem:[#allocation5 + $0x3a8] sm:$0xff]  ;;  %v1108_v39 = vld [vmem:[#allocation5 + $0x3a0] sm:$0xff]  ;;  %v1106_v43 = vld [vmem:[#allocation5 + $0x390] sm:$0xff] }
 0x41a   :  { %v1653_v50 = vpop.eup %1652  ;;  %761 = vperm.xlu1 %1636, %v1651_v46   ;;  %v1000_v46 = vld [vmem:[#allocation5 + $0x40] sm:$0xff]  ;;  %1222 = vmatpush1.msra.mxu1 %v1068_v42 }
 0x41b   :  { %v1655_v21 = vpop.eup %1654  ;;  %v715_v1 = vadd.f32 1.0, %v1653_v50  ;;  %v999_v50 = vld [vmem:[#allocation5 + $0x38] sm:$0xff]  ;;  %1223 = vmatprep.subr.mxu1 %v1067_v44  ;;  %1155 = vmatpush1.msra.mxu0 %v1000_v46  ;;  %v1040_v42 = vld [vmem:[#allocation5 + $0x180] sm:$0xff]  ;;  %v1105_v44 = vld [vmem:[#allocation5 + $0x388] sm:$0xff] }
 0x41c   :  { %v1657_v55 = vpop.eup %1656  ;;  %756 = vperm.xlu0 %1637, %v1655_v21   ;;  %1224 = vmatpush1.msra.mxu1 %v1066_v47  ;;  %v1104_v46 = vld [vmem:[#allocation5 + $0x380] sm:$0xff]  ;;  %v1037_v47 = vld [vmem:[#allocation5 + $0x168] sm:$0xff] }
 0x41d   :  { %v1659_v61 = vpop.eup %1658  ;;  %1676 = vrcp.f32 %v715_v1  ;;  %v714_v58 = vadd.f32 1.0, %v1657_v55  ;;  %v1064_v1 = vld [vmem:[#allocation5 + $0x240] sm:$0xff]  ;;  %1156 = vmatprep.subr.mxu0 %v999_v50  ;;  %1225 = vmatprep.subr.mxu1 %v1065_v53  ;;  %v1035_v53 = vld [vmem:[#allocation5 + $0x158] sm:$0xff] }
 0x41e   :  { %v1661_v63 = vpop.eup %1660  ;;  %771 = vperm.xlu1 %1636, %v1659_v61   ;;  %1678 = vpow2.f32 %v1446_v51  ;;  %v996_v55 = vld [vmem:[#allocation5 + $0x20] sm:$0xff]  ;;  %1157 = vmatpush1.msra.mxu0 %v998_v54  ;;  %v1101_v54 = vld [vmem:[#allocation5 + $0x368] sm:$0xff] }
 0x41f   :  { %1680 = vrcp.f32 %v714_v58  ;;  %v717_v4 = vadd.f32 1.0, %v1661_v63  ;;  %v1663_v6 = vpop.eup %1662  ;;  %1226 = vmatpush1.msra.mxu1 %v1064_v1  ;;  %1158 = vmatprep.subr.mxu0 %v997_v20  ;;  %v994_v58 = vld [vmem:[#allocation5 + $0x10] sm:$0xff]  ;;  %v1060_v63 = vld [vmem:[#allocation5 + $0x220] sm:$0xff]  ;;  %v1033_v20 = vld [vmem:[#allocation5 + $0x148] sm:$0xff] }
 0x420   :  { %1682 = vrcp.f32 %v711_v56  ;;  %v1665_v9 = vpop.eup %1664  ;;  %v716_v14 = vadd.f32 1.0, %v1663_v6  ;;  %v1062_v56 = vld [vmem:[#allocation5 + $0x230] sm:$0xff]  ;;  %1227 = vmatprep.subr.mxu1 %v1063_v25  ;;  %1159 = vmatpush1.msra.mxu0 %v996_v55  ;;  %v1057_v6 = vld [vmem:[#allocation5 + $0x208] sm:$0xff]  ;;  %v1036_v50 = vld [vmem:[#allocation5 + $0x160] sm:$0xff] }
 0x421   :  { %1684 = vrcp.f32 %v717_v4  ;;  %v1667_v12 = vpop.eup %1666  ;;  %1228 = vmatpush1.msra.mxu1 %v1062_v56  ;;  %1160 = vmatprep.subr.mxu0 %v995_v59  ;;  %v992_v4 = vld [vmem:[#allocation5] sm:$0xff]  ;;  %v1099_v25 = vld [vmem:[#allocation5 + $0x358] sm:$0xff]  ;;  %v1098_v56 = vld [vmem:[#allocation5 + $0x350] sm:$0xff] }
 0x422   :  { %766 = vperm.xlu1 %1636, %v1665_v9   ;;  %1686 = vpow2.f32 %v1438_v3  ;;  %v1669_v16 = vpop.eup %1668  ;;  %v719_v17 = vadd.f32 1.0, %v1667_v12  ;;  %1229 = vmatprep.subr.mxu1 %v1061_v60  ;;  %v1059_v3 = vld [vmem:[#allocation5 + $0x218] sm:$0xff]  ;;  %v1056_v9 = vld [vmem:[#allocation5 + $0x200] sm:$0xff]  ;;  %v1097_v59 = vld [vmem:[#allocation5 + $0x348] sm:$0xff] }
 0x423   :  { %v1671_v22 = vpop.eup %1670  ;;  %1688 = vrcp.f32 %v716_v14  ;;  %v713_v35 = vadd.f32 1.0, %v1669_v16  ;;  %1161 = vmatpush1.msra.mxu0 %v994_v58  ;;  %1230 = vmatpush1.msra.mxu1 %v1060_v63  ;;  %v1051_v14 = vld [vmem:[#allocation5 + $0x1d8] sm:$0xff]  ;;  %v1050_v16 = vld [vmem:[#allocation5 + $0x1d0] sm:$0xff]  ;;  %v1100_v1 = vld [vmem:[#allocation5 + $0x360] sm:$0xff] }
 0x424   :  { %1690 = vrcp.f32 %v719_v17  ;;  %1162 = vmatprep.subr.mxu0 %v993_v0  ;;  %1231 = vmatprep.subr.mxu1 %v1059_v3  ;;  %v1116_v17 = vld [vmem:[#allocation5 + $0x3e0] sm:$0xff]  ;;  %v1030_v60 = vld [vmem:[#allocation5 + $0x130] sm:$0xff]  ;;  %v1029_v58 = vld [vmem:[#allocation5 + $0x128] sm:$0xff] }
 0x425   :  { %v1673_v26 = vpop.eup %1672  ;;  %1163 = vmatpush1.msra.mxu0 %v992_v4  ;;  %1232 = vmatpush1.msra.mxu1 %v1058_v52  ;;  %v1032_v55 = vld [vmem:[#allocation5 + $0x140] sm:$0xff]  ;;  %v1094_v0 = vld [vmem:[#allocation5 + $0x330] sm:$0xff]  ;;  %v1093_v3 = vld [vmem:[#allocation5 + $0x328] sm:$0xff] }
 0x426   :  { %776 = vperm.xlu1 %1636, %v1671_v22   ;;  %v721_v29 = vadd.f32 1.0, %v1673_v26  ;;  %v1675_v32 = vpop.eup %1674  ;;  %1164 = vmatprep.subr.mxu0 %v1055_v5  ;;  %v1115_v22 = vld [vmem:[#allocation5 + $0x3d8] sm:$0xff]  ;;  %v1028_v63 = vld [vmem:[#allocation5 + $0x120] sm:$0xff]  ;;  %v1026_v4 = vld [vmem:[#allocation5 + $0x110] sm:$0xff] }
 0x427   :  { %v718_v41 = vadd.f32 1.0, %v1675_v32  ;;  %1233 = vmatprep.subr.mxu1 %v1057_v6  ;;  %1165 = vmatpush2.msra.mxu0 %v1054_v7  ;;  %v1047_v26 = vld [vmem:[#allocation5 + $0x1b8] sm:$0xff]  ;;  %v1092_v52 = vld [vmem:[#allocation5 + $0x320] sm:$0xff]  ;;  %v1025_v5 = vld [vmem:[#allocation5 + $0x108] sm:$0xff] }
 0x428   :  { %1692 = vrcp.f32 %v721_v29  ;;  %1234 = vmatpush1.msra.mxu1 %v1056_v9  ;;  %1166 = vmatprep.subr.mxu0 %v1053_v10  ;;  %v1112_v29 = vld [vmem:[#allocation5 + $0x3c0] sm:$0xff]  ;;  %v1111_v32 = vld [vmem:[#allocation5 + $0x3b8] sm:$0xff]  ;;  %v1089_v9 = vld [vmem:[#allocation5 + $0x308] sm:$0xff] }
 0x429   :  { %1694 = vrcp.f32 %v713_v35  ;;  %1235 = vmatprep.subr.mxu1 %v1119_v11  ;;  %1167 = vmatpush2.msra.mxu0 %v1052_v49  ;;  %v1110_v35 = vld [vmem:[#allocation5 + $0x3b0] sm:$0xff]  ;;  %v1091_v6 = vld [vmem:[#allocation5 + $0x318] sm:$0xff]  ;;  %v1024_v7 = vld [vmem:[#allocation5 + $0x100] sm:$0xff] }
 0x42a   :  { %v1677_v38 = vpop.eup %1676  ;;  %1696 = vrcp.f32 %v718_v41  ;;  %1236 = vmatpush2.msra.mxu1 %v1118_v13  ;;  %1168 = vmatprep.subr.mxu0 %v1051_v14  ;;  %v1107_v41 = vld [vmem:[#allocation5 + $0x398] sm:$0xff]  ;;  %v1088_v10 = vld [vmem:[#allocation5 + $0x300] sm:$0xff] }
 0x42b   :  { %v1679_v40 = vpop.eup %1678  ;;  %801 = vperm.xlu1 %1636, %v1677_v38   ;;  %1237 = vmatprep.subr.mxu1 %v1117_v15  ;;  %v1042_v38 = vld [vmem:[#allocation5 + $0x190] sm:$0xff] }
 0x42c   :  { %v1681_v33 = vpop.eup %1680  ;;  %v720_v51 = vadd.f32 1.0, %v1679_v40  ;;  %1169 = vmatpush2.msra.mxu0 %v1050_v16  ;;  %1238 = vmatpush2.msra.mxu1 %v1116_v17  ;;  %v1041_v40 = vld [vmem:[#allocation5 + $0x188] sm:$0xff]  ;;  %v2043_v16 = vld [vmem:[#allocation2] sm:$0xff] }
 0x42d   :  { %v1683_v45 = vpop.eup %1682  ;;  %796 = vperm.xlu0 %1637, %v1681_v33   ;;  %1170 = vmatprep.subr.mxu0 %v1049_v18  ;;  %v1039_v33 = vld [vmem:[#allocation5 + $0x178] sm:$0xff]  ;;  %v2048_v18 = vld [vmem:[#allocation2 + $0x8] sm:$0xff] }
 0x42e   :  { %v1685_v48 = vpop.eup %1684  ;;  %1698 = vrcp.f32 %v720_v51  ;;  %1239 = vmatprep.subr.mxu1 %v1115_v22  ;;  %1171 = vmatpush2.msra.mxu0 %v1048_v23  ;;  %v1102_v51 = vld [vmem:[#allocation5 + $0x370] sm:$0xff]  ;;  %2408 = vst [vmem:[#allocation11_spill] sm:$0xff] %v2048_v18 }
 0x42f   :  { %781 = vperm.xlu1 %1636, %v1683_v45   ;;  %v1687_v21 = vpop.eup %1686  ;;  %1240 = vmatpush2.msra.mxu1 %v1114_v24  ;;  %v1038_v45 = vld [vmem:[#allocation5 + $0x170] sm:$0xff]  ;;  %v2058_v24 = vld [vmem:[#allocation2 + $0x18] sm:$0xff] }
 0x430   :  { %v712_v57 = vadd.f32 1.0, %v1687_v21  ;;  %v1689_v61 = vpop.eup %1688  ;;  %1172 = vmatprep.subr.mxu0 %v1047_v26  ;;  %1241 = vmatprep.subr.mxu1 %v1113_v27  ;;  %v1034_v21 = vld [vmem:[#allocation5 + $0x150] sm:$0xff]  ;;  %2410 = vst [vmem:[#allocation13_spill] sm:$0xff] %v2058_v24  ;;  %v2063_v27 = vld [vmem:[#allocation2 + $0x20] sm:$0xff] }
 0x431   :  { %811 = vperm.xlu0 %1637, %v1685_v48   ;;  %v1691_v62 = vpop.eup %1690  ;;  %1173 = vmatpush2.msra.mxu0 %v1046_v28  ;;  %v1103_v48 = vld [vmem:[#allocation5 + $0x378] sm:$0xff]  ;;  %v2053_v22 = vld [vmem:[#allocation2 + $0x10] sm:$0xff] }
 0x432   :  { %1700 = vrcp.f32 %v712_v57  ;;  %1242 = vmatpush2.msra.mxu1 %v1112_v29  ;;  %1174 = vmatprep.subr.mxu0 %v1045_v31  ;;  %v1031_v57 = vld [vmem:[#allocation5 + $0x138] sm:$0xff]  ;;  %v2068_v29 = vld [vmem:[#allocation2 + $0x28] sm:$0xff] }
 0x433   :  { %1243 = vmatprep.subr.mxu1 %v1111_v32  ;;  %1175 = vmatpush2.msra.mxu0 %v1044_v34  ;;  %2412 = vst [vmem:[#allocation15_spill] sm:$0xff] %v2068_v29 }
 0x434   :  { %1244 = vmatpush2.msra.mxu1 %v1110_v35  ;;  %1176 = vmatprep.subr.mxu0 %v1043_v36 }
 0x435   :  { %806 = vperm.xlu0 %1637, %v1689_v61   ;;  %v1693_v2 = vpop.eup %1692  ;;  %1245 = vmatprep.subr.mxu1 %v1109_v37  ;;  %v1096_v61 = vld [vmem:[#allocation5 + $0x340] sm:$0xff] }
 0x436   :  { %831 = vperm.xlu1 %1636, %v1693_v2   ;;  %v1695_v8 = vpop.eup %1694  ;;  %1177 = vmatpush2.msra.mxu0 %v1042_v38  ;;  %v1027_v2 = vld [vmem:[#allocation5 + $0x118] sm:$0xff]  ;;  %v2079_v38 = vld [vmem:[#allocation2 + $0x80] sm:$0xff] }
 0x437   :  { %v1697_v12 = vpop.eup %1696  ;;  %1246 = vmatpush2.msra.mxu1 %v1108_v39  ;;  %1178 = vmatprep.subr.mxu0 %v1041_v40  ;;  %v2084_v40 = vld [vmem:[#allocation2 + $0x88] sm:$0xff] }
 0x438   :  { %1247 = vmatprep.subr.mxu1 %v1107_v41  ;;  %1179 = vmatpush2.msra.mxu0 %v1040_v42  ;;  %2414 = vst [vmem:[#allocation17_spill] sm:$0xff] %v2084_v40 }
 0x439   :  { %821 = vperm.xlu0 %1637, %v1691_v62   ;;  %1248 = vmatpush2.msra.mxu1 %v1106_v43  ;;  %v1095_v62 = vld [vmem:[#allocation5 + $0x338] sm:$0xff]  ;;  %v2089_v43 = vld [vmem:[#allocation2 + $0x30] sm:$0xff] }
 0x43a   :  { %791 = vperm.xlu1 %1636, %v1695_v8   ;;  %1180 = vmatprep.subr.mxu0 %v1039_v33  ;;  %v1090_v8 = vld [vmem:[#allocation5 + $0x310] sm:$0xff] }
 0x43b   :  { %v1699_v19 = vpop.eup %1698  ;;  %1249 = vmatprep.subr.mxu1 %v1105_v44  ;;  %1181 = vmatpush2.msra.mxu0 %v1038_v45  ;;  %v2094_v44 = vld [vmem:[#allocation2 + $0x38] sm:$0xff] }
 0x43c   :  { %1250 = vmatpush2.msra.mxu1 %v1104_v46  ;;  %1182 = vmatprep.subr.mxu0 %v1037_v47  ;;  %2416 = vst [vmem:[#allocation19_spill] sm:$0xff] %v2094_v44  ;;  %v2099_v47 = vld [vmem:[#allocation2 + $0x90] sm:$0xff] }
 0x43d   :  { %816 = vperm.xlu0 %1637, %v1697_v12   ;;  %1251 = vmatprep.subr.mxu1 %v1103_v48 }
 0x43e   :  { %1183 = vmatpush2.msra.mxu0 %v1036_v50  ;;  %1252 = vmatpush2.msra.mxu1 %v1102_v51  ;;  %v2104_v50 = vld [vmem:[#allocation2 + $0x98] sm:$0xff] }
 0x43f   :  { %v1701_v30 = vpop.eup %1700  ;;  %1184 = vmatprep.subr.mxu0 %v1035_v53  ;;  %1253 = vmatprep.subr.mxu1 %v1101_v54  ;;  %2418 = vst [vmem:[#allocation21_spill] sm:$0xff] %v2104_v50  ;;  %v2109_v53 = vld [vmem:[#allocation2 + $0xa0] sm:$0xff] }
 0x440   :  { %1185 = vmatpush2.msra.mxu0 %v1034_v21  ;;  %1254 = vmatpush2.msra.mxu1 %v1100_v1  ;;  %v2114_v21 = vld [vmem:[#allocation2 + $0xa8] sm:$0xff] }
 0x441   :  { %826 = vperm.xlu0 %1637, %v1699_v19   ;;  %1186 = vmatprep.subr.mxu0 %v1033_v20  ;;  %2420 = vst [vmem:[#allocation23_spill] sm:$0xff] %v2114_v21 }
 0x442   :  { %1255 = vmatprep.subr.mxu1 %v1099_v25  ;;  %1187 = vmatpush2.msra.mxu0 %v1032_v55  ;;  %v2121_v55 = vld [vmem:[#allocation2 + $0x40] sm:$0xff] }
 0x443   :  { %1256 = vmatpush2.msra.mxu1 %v1098_v56  ;;  %1188 = vmatprep.subr.mxu0 %v1031_v57  ;;  %v2126_v57 = vld [vmem:[#allocation2 + $0x48] sm:$0xff] }
 0x444   :  { %1257 = vmatprep.subr.mxu1 %v1097_v59  ;;  %1189 = vmatpush2.msra.mxu0 %v1030_v60  ;;  %2422 = vst [vmem:[#allocation25_spill] sm:$0xff] %v2126_v57 }
 0x445   :  { %786 = vperm.xlu0 %1637, %v1701_v30   ;;  %1258 = vmatpush2.msra.mxu1 %v1096_v61 }
 0x446   :  { %1190 = vmatprep.subr.mxu0 %v1029_v58  ;;  %1259 = vmatprep.subr.mxu1 %v1095_v62  ;;  %v2135_v62 = vld [vmem:[#allocation2 + $0x50] sm:$0xff] }
 0x447   :  { %1191 = vmatpush2.msra.mxu0 %v1028_v63  ;;  %1260 = vmatpush2.msra.mxu1 %v1094_v0  ;;  %v2140_v0 = vld [vmem:[#allocation2 + $0x58] sm:$0xff] }
 0x448   :  { %1192 = vmatprep.subr.mxu0 %v1027_v2  ;;  %1261 = vmatprep.subr.mxu1 %v1093_v3  ;;  %2424 = vst [vmem:[#allocation27_spill] sm:$0xff] %v2140_v0  ;;  %v2145_v3 = vld [vmem:[#allocation2 + $0xb0] sm:$0xff] }
 0x449   :  { %1193 = vmatpush2.msra.mxu0 %v1026_v4  ;;  %1262 = vmatpush2.msra.mxu1 %v1092_v52  ;;  %v2150_v52 = vld [vmem:[#allocation2 + $0xb8] sm:$0xff] }
 0x44a   :  { %1194 = vmatprep.subr.mxu0 %v1025_v5  ;;  %1263 = vmatprep.subr.mxu1 %v1091_v6  ;;  %2426 = vst [vmem:[#allocation29_spill] sm:$0xff] %v2150_v52 }
 0x44b   :  { %1195 = vmatpush2.msra.mxu0 %v1024_v7  ;;  %1264 = vmatpush2.msra.mxu1 %v1090_v8 }
 0x44c   :  { %1265 = vmatprep.subr.mxu1 %v1089_v9 }
 0x44d   :  { %1266 = vmatpush2.msra.mxu1 %v1088_v10 }
 0x495   :  { %v762_v11 = vpop.permute.xlu1 %761 }
 0x496   :  { %v2056_v23 = vmul.f32 %v2053_v22, %v762_v11  ;;  %v2061_v26 = vmul.f32 %v2058_v24, %v762_v11 }
 0x497   :  { %v757_v13 = vpop.permute.xlu0 %756 }
 0x498   :  { %v2046_v17 = vmul.f32 %v2043_v16, %v757_v13  ;;  %v2051_v19 = vmul.f32 %v2048_v18, %v757_v13  ;;  %2411 = vst [vmem:[#allocation14_spill] sm:$0xff] %v2061_v26 }
 0x499   :  { %v772_v12 = vpop.permute.xlu1 %771 }
 0x49a   :  { %2409 = vst [vmem:[#allocation12_spill] sm:$0xff] %v2051_v19  ;;  %v892_v34 = vadd.f32 %v2056_v23, %v2046_v17  ;;  %v905_v35 = vadd.f32 %v2061_v26, %v2051_v19  ;;  %v2092_v33 = vmul.f32 %v2089_v43, %v772_v12  ;;  %v2097_v45 = vmul.f32 %v2094_v44, %v772_v12 }
 0x49c   :  { %2417 = vst [vmem:[#allocation20_spill] sm:$0xff] %v2097_v45  ;;  %v867_v11 = vmax.f32 %v2056_v23, %v2092_v33  ;;  %v880_v12 = vmax.f32 %v2061_v26, %v2097_v45 }
 0x49d   :  { %v767_v49 = vpop.permute.xlu1 %766 }
 0x49e   :  { %v2066_v28 = vmul.f32 %v2063_v27, %v767_v49  ;;  %v2071_v30 = vmul.f32 %v2068_v29, %v767_v49  ;;  %v2165_v49 = vld [vmem:[#allocation2 + $0xd0] sm:$0xff]  ;;  %v2230_v29 = vld [vmem:[#allocation2 + $0xe8] sm:$0xff] }
 0x49f   :  { %2428 = vst [vmem:[#allocation31_spill] sm:$0xff] %v2165_v49  ;;  %2438 = vst [vmem:[#allocation41_spill] sm:$0xff] %v2230_v29 }
 0x4a0   :  { %2413 = vst [vmem:[#allocation16_spill] sm:$0xff] %v2071_v30  ;;  %v893_v36 = vadd.f32 %v892_v34, %v2066_v28  ;;  %v906_v37 = vadd.f32 %v905_v35, %v2071_v30  ;;  %v866_v7 = vmax.f32 %v2046_v17, %v2066_v28  ;;  %v879_v8 = vmax.f32 %v2051_v19, %v2071_v30 }
 0x4a1   :  { %v777_v14 = vpop.permute.xlu1 %776 }
 0x4a2   :  { %v894_v20 = vadd.f32 %v893_v36, %v2092_v33  ;;  %v907_v25 = vadd.f32 %v906_v37, %v2097_v45  ;;  %v2124_v56 = vmul.f32 %v2121_v55, %v777_v14  ;;  %v2129_v59 = vmul.f32 %v2126_v57, %v777_v14  ;;  %v2170_v14 = vld [vmem:[#allocation2 + $0xd8] sm:$0xff]  ;;  %v2225_v57 = vld [vmem:[#allocation2 + $0xe0] sm:$0xff] }
 0x4a3   :  { %2429 = vst [vmem:[#allocation32_spill] sm:$0xff] %v2170_v14  ;;  %2437 = vst [vmem:[#allocation40_spill] sm:$0xff] %v2225_v57 }
 0x4a4   :  { %2423 = vst [vmem:[#allocation26_spill] sm:$0xff] %v2129_v59  ;;  %v895_v34 = vadd.f32 %v894_v20, %v2124_v56  ;;  %v908_v35 = vadd.f32 %v907_v25, %v2129_v59  ;;  %v2195_v20 = vld [vmem:[#allocation2 + $0xc0] sm:$0xff] }
 0x4a5   :  { %2431 = vst [vmem:[#allocation34_spill] sm:$0xff] %v2195_v20 }
 0x4a6   :  { %v802_v31 = vpop.permute.xlu1 %801 }
 0x4a7   :  { %v2102_v48 = vmul.f32 %v2099_v47, %v802_v31  ;;  %v2107_v51 = vmul.f32 %v2104_v50, %v802_v31  ;;  %v2176_v31 = vmax.f32 %v866_v7, %v2124_v56  ;;  %v2200_v7 = vld [vmem:[#allocation2 + $0xc8] sm:$0xff]  ;;  %v2216_v50 = vld [vmem:[#allocation2 + $0xf8] sm:$0xff] }
 0x4a8   :  { %v797_v15 = vpop.permute.xlu0 %796  ;;  %2432 = vst [vmem:[#allocation35_spill] sm:$0xff] %v2200_v7  ;;  %2435 = vst [vmem:[#allocation38_spill] sm:$0xff] %v2216_v50 }
 0x4a9   :  { %v2082_v39 = vmul.f32 %v2079_v38, %v797_v15  ;;  %v2087_v41 = vmul.f32 %v2084_v40, %v797_v15  ;;  %2419 = vst [vmem:[#allocation22_spill] sm:$0xff] %v2107_v51 }
 0x4aa   :  { %v782_v46 = vpop.permute.xlu1 %781 }
 0x4ab   :  { %2415 = vst [vmem:[#allocation18_spill] sm:$0xff] %v2087_v41  ;;  %v947_v60 = vadd.f32 %v2102_v48, %v2082_v39  ;;  %v960_v61 = vadd.f32 %v2107_v51, %v2087_v41  ;;  %v2138_v63 = vmul.f32 %v2135_v62, %v782_v46  ;;  %v2143_v2 = vmul.f32 %v2140_v0, %v782_v46 }
 0x4ac   :  { %v812_v32 = vpop.permute.xlu0 %811 }
 0x4ad   :  { %2425 = vst [vmem:[#allocation28_spill] sm:$0xff] %v2143_v2  ;;  %v2148_v4 = vmul.f32 %v2145_v3, %v812_v32  ;;  %v2153_v5 = vmul.f32 %v2150_v52, %v812_v32  ;;  %v2179_v32 = vmax.f32 %v879_v8, %v2129_v59  ;;  %v2184_v37 = vmax.f32 %v867_v11, %v2138_v63  ;;  %v2211_v52 = vld [vmem:[#allocation2 + $0xf0] sm:$0xff] }
 0x4ae   :  { %2434 = vst [vmem:[#allocation37_spill] sm:$0xff] %v2211_v52 }
 0x4af   :  { %2427 = vst [vmem:[#allocation30_spill] sm:$0xff] %v2153_v5  ;;  %v922_v46 = vmax.f32 %v2102_v48, %v2148_v4 }
 0x4b0   :  { %v807_v42 = vpop.permute.xlu0 %806 }
 0x4b1   :  { %v2112_v54 = vmul.f32 %v2109_v53, %v807_v42  ;;  %v2117_v1 = vmul.f32 %v2114_v21, %v807_v42  ;;  %v832_v6 = vpop.permute.xlu1 %831  ;;  %v2187_v42 = vmax.f32 %v880_v12, %v2143_v2 }
 0x4b2   :  { %v2214_v21 = vmul.f32 %v2211_v52, %v832_v6 }
 0x4b3   :  { %2421 = vst [vmem:[#allocation24_spill] sm:$0xff] %v2117_v1  ;;  %v948_v9 = vadd.f32 %v947_v60, %v2112_v54  ;;  %v961_v10 = vadd.f32 %v960_v61, %v2117_v1  ;;  %v935_v60 = vmax.f32 %v2107_v51, %v2153_v5  ;;  %v921_v11 = vmax.f32 %v2082_v39, %v2112_v54 }
 0x4b4   :  { %v822_v58 = vpop.permute.xlu0 %821  ;;  %v934_v12 = vmax.f32 %v2087_v41, %v2117_v1  ;;  %v909_v1 = vadd.f32 %v908_v35, %v2143_v2 }
 0x4b5   :  { %v2168_v13 = vmul.f32 %v2165_v49, %v822_v58  ;;  %v2173_v15 = vmul.f32 %v2170_v14, %v822_v58  ;;  %v949_v61 = vadd.f32 %v948_v9, %v2148_v4  ;;  %v962_v58 = vadd.f32 %v961_v10, %v2153_v5  ;;  %v792_v14 = vpop.permute.xlu1 %791 }
 0x4b6   :  { %v896_v5 = vadd.f32 %v895_v34, %v2138_v63 }
 0x4b7   :  { %2430 = vst [vmem:[#allocation33_spill] sm:$0xff] %v2173_v15  ;;  %v924_v9 = vmax.f32 %v922_v46, %v2168_v13  ;;  %v937_v10 = vmax.f32 %v935_v60, %v2173_v15 }
 0x4b8   :  { %v817_v36 = vpop.permute.xlu0 %816 }
 0x4b9   :  { %v2198_v25 = vmul.f32 %v2195_v20, %v817_v36  ;;  %v2203_v8 = vmul.f32 %v2200_v7, %v817_v36  ;;  %v2219_v36 = vmul.f32 %v2216_v50, %v832_v6  ;;  %v2235_v6 = vld [vmem:[#allocation2 + $0x70] sm:$0xff]  ;;  %v926_v18 = vmax.f32 %v924_v9, %v2214_v21 }
 0x4bb   :  { %2433 = vst [vmem:[#allocation36_spill] sm:$0xff] %v2203_v8  ;;  %2436 = vst [vmem:[#allocation39_spill] sm:$0xff] %v2219_v36  ;;  %v950_v7 = vadd.f32 %v949_v61, %v2198_v25  ;;  %v963_v40 = vadd.f32 %v962_v58, %v2203_v8  ;;  %v923_v46 = vmax.f32 %v921_v11, %v2198_v25  ;;  %v2240_v58 = vld [vmem:[#allocation2 + $0x78] sm:$0xff] }
 0x4bc   :  { %v827_v0 = vpop.permute.xlu0 %826  ;;  %v936_v60 = vmax.f32 %v934_v12, %v2203_v8  ;;  %v2238_v61 = vmul.f32 %v2235_v6, %v792_v14  ;;  %2440 = vst [vmem:[#allocation43_spill] sm:$0xff] %v2240_v58  ;;  %v2243_v11 = vmul.f32 %v2240_v58, %v792_v14  ;;  %v939_v8 = vmax.f32 %v937_v10, %v2219_v36  ;;  %v2260_v10 = vld [vmem:[#allocation2 + $0x68] sm:$0xff] }
 0x4bd   :  { %v2228_v44 = vmul.f32 %v2225_v57, %v827_v0  ;;  %v2233_v24 = vmul.f32 %v2230_v29, %v827_v0  ;;  %v951_v12 = vadd.f32 %v950_v7, %v2168_v13  ;;  %v964_v50 = vadd.f32 %v963_v40, %v2173_v15  ;;  %v2255_v40 = vld [vmem:[#allocation2 + $0x60] sm:$0xff]  ;;  %2442 = vst [vmem:[#allocation45_spill] sm:$0xff] %v2260_v10 }
 0x4be   :  { %2441 = vst [vmem:[#allocation44_spill] sm:$0xff] %v2243_v11  ;;  %v871_v34 = vmax.f32 %v2184_v37, %v2238_v61  ;;  %v884_v35 = vmax.f32 %v2187_v42, %v2243_v11 }
 0x4bf   :  { %2439 = vst [vmem:[#allocation42_spill] sm:$0xff] %v2233_v24  ;;  %v925_v0 = vmax.f32 %v923_v46, %v2228_v44  ;;  %v938_v29 = vmax.f32 %v936_v60, %v2233_v24  ;;  %v952_v51 = vadd.f32 %v951_v12, %v2228_v44  ;;  %v965_v14 = vadd.f32 %v964_v50, %v2233_v24 }
 0x4c0   :  { %v787_v58 = vpop.permute.xlu0 %786 }
 0x4c1   :  { %v927_v7 = vmax.f32 %v925_v0, %v926_v18  ;;  %v940_v41 = vmax.f32 %v938_v29, %v939_v8  ;;  %v2258_v9 = vmul.f32 %v2255_v40, %v787_v58  ;;  %v2263_v46 = vmul.f32 %v2260_v10, %v787_v58 }
 0x4c2   :  { %v953_v50 = vadd.f32 %v952_v51, %v2214_v21  ;;  %v966_v18 = vadd.f32 %v965_v14, %v2219_v36 }
 0x4c3   :  { %2443 = vst [vmem:[#allocation46_spill] sm:$0xff] %v2263_v46  ;;  %v928_v29 = vrot.slane %v927_v7, 4  ;;  %v941_v8 = vrot.slane %v940_v41, 4  ;;  %v870_v60 = vmax.f32 %v2176_v31, %v2258_v9  ;;  %v883_v12 = vmax.f32 %v2179_v32, %v2263_v46 }
 0x4c4   :  { %v954_v58 = vrot.slane %v953_v50, 4  ;;  %v967_v0 = vrot.slane %v966_v18, 4  ;;  %v897_v10 = vadd.f32 %v896_v5, %v2258_v9  ;;  %v910_v37 = vadd.f32 %v909_v1, %v2263_v46 }
 0x4c5   :  { %v929_v24 = vmax.f32 %v927_v7, %v928_v29  ;;  %v942_v42 = vmax.f32 %v940_v41, %v941_v8  ;;  %v872_v15 = vmax.f32 %v870_v60, %v871_v34  ;;  %v885_v51 = vmax.f32 %v883_v12, %v884_v35 }
 0x4c6   :  { %v955_v2 = vadd.f32 %v954_v58, %v953_v50  ;;  %v968_v14 = vadd.f32 %v967_v0, %v966_v18  ;;  %v898_v36 = vadd.f32 %v897_v10, %v2238_v61  ;;  %v911_v59 = vadd.f32 %v910_v37, %v2243_v11 }
 0x4c7   :  { %v930_v31 = vrot.slane %v929_v24, 2  ;;  %v873_v45 = vrot.slane %v872_v15, 4  ;;  %v886_v30 = vrot.slane %v885_v51, 4  ;;  %v943_v32 = vrot.slane %v942_v42, 2 }
 0x4c8   :  { %v956_v26 = vrot.slane %v955_v2, 2  ;;  %v899_v19 = vrot.slane %v898_v36, 4  ;;  %v912_v52 = vrot.slane %v911_v59, 4  ;;  %v969_v5 = vrot.slane %v968_v14, 2 }
 0x4c9   :  { %v931_v57 = vmax.f32 %v929_v24, %v930_v31  ;;  %v874_v1 = vmax.f32 %v872_v15, %v873_v45  ;;  %v887_v7 = vmax.f32 %v885_v51, %v886_v30  ;;  %v944_v41 = vmax.f32 %v942_v42, %v943_v32 }
 0x4ca   :  { %v957_v34 = vadd.f32 %v956_v26, %v955_v2  ;;  %v900_v35 = vadd.f32 %v899_v19, %v898_v36  ;;  %v913_v50 = vadd.f32 %v912_v52, %v911_v59  ;;  %v970_v18 = vadd.f32 %v969_v5, %v968_v14 }
 0x4cb   :  { %v875_v29 = vrot.slane %v874_v1, 2  ;;  %v888_v10 = vrot.slane %v887_v7, 2  ;;  %v945_v8 = vrot.slane %v944_v41, 1  ;;  %v932_v60 = vrot.slane %v931_v57, 1 }
 0x4cc   :  { %v901_v12 = vrot.slane %v900_v35, 2  ;;  %v914_v58 = vrot.slane %v913_v50, 2  ;;  %v971_v0 = vrot.slane %v970_v18, 1  ;;  %v958_v37 = vrot.slane %v957_v34, 1 }
 0x4cd   :  { %v876_v11 = vmax.f32 %v874_v1, %v875_v29  ;;  %v889_v46 = vmax.f32 %v887_v7, %v888_v10  ;;  %v946_v49 = vmax.f32 %v944_v41, %v945_v8  ;;  %v933_v20 = vmax.f32 %v931_v57, %v932_v60 }
 0x4ce   :  { %v902_v24 = vadd.f32 %v901_v12, %v900_v35  ;;  %v915_v45 = vadd.f32 %v914_v58, %v913_v50  ;;  %v972_v30 = vadd.f32 %v971_v0, %v970_v18  ;;  %v959_v15 = vadd.f32 %v958_v37, %v957_v34 }
 0x4cf   :  { %v890_v26 = vrot.slane %v889_v46, 1  ;;  %v877_v19 = vrot.slane %v876_v11, 1  ;;  %v980_v51 = vrot.slane %v946_v49, 7  ;;  %v979_v31 = vrot.slane %v933_v20, 7 }
 0x4d0   :  { %v916_v59 = vrot.slane %v915_v45, 1  ;;  %v974_v2 = vmul.f32 0.015625, %v972_v30  ;;  %v903_v52 = vrot.slane %v902_v24, 1  ;;  %v973_v36 = vmul.f32 0.015625, %v959_v15 }
 0x4d1   :  { %v891_v42 = vmax.f32 %v889_v46, %v890_v26  ;;  %v878_v14 = vmax.f32 %v876_v11, %v877_v19  ;;  %v1122_v49 = vlaneseq  ;;  %v1120_v46 = vld [vmem:[%s2370_s4] sm:$0x3]  ;;  %s1818_s4 = smov [#allocation7]  }
 0x4d2   :  { %v917_v32 = vadd.f32 %v916_v59, %v915_v45  ;;  %v904_v5 = vadd.f32 %v903_v52, %v902_v24  ;;  %v982_v41 = vrot.slane %v974_v2, 7  ;;  %v981_v35 = vrot.slane %v973_v36, 7  ;;  %s1403_s13 = sshll.u32 %s1818_s4, 4  ;;  %s1404_s13 = int_to_ptr.vmem [resolvable:$true] %s1403_s13 }
 0x4d3   :  { %v989_v1 = vsel %vm987_vm3, %v891_v42, %v980_v51  ;;  %v988_v57 = vsel %vm987_vm3, %v878_v14, %v979_v31  ;;  %v1123_v20 = vshrl.u32 %v1122_v49, 7  ;;  %v2447_v49 = vld [vmem:[#allocation37_spill] sm:$0xff]  ;;  %s1782_s14 = scalar_lea.vmem %s1404_s13, 4096  ;;  %p1787_p11 = scmp.lt.s32.totalorder %s1404_s13, %s1404_s13 }
 0x4d4   :  { %1196 = vmatprep.mubr.f32.mxu0 %v989_v1  ;;  %v920_v7 = vmul.f32 0.015625, %v917_v32  ;;  %v919_v34 = vmul.f32 0.015625, %v904_v5  ;;  %p1783_p10 = scmp.ne.s32.totalorder %s1404_s13, %s1782_s14  ;;  %p1788_p12 = scmp.lt.s32.totalorder %s1782_s14, %s1782_s14 }
 0x4d5   :  { %1197 = vmatmul.mubr.f32.vlgmr.msra.gmra.mxu0 %v988_v57  ;;  %v2283_v11 = vsub.s32 0, %v1123_v20  ;;  %v2288_v29 = vsub.s32 1, %v1123_v20  ;;  %v2449_v20 = vld [vmem:[#allocation14_spill] sm:$0xff] }
 0x4d6   :  { %v991_v50 = vsel %vm987_vm3, %v920_v7, %v982_v41  ;;  %v990_v18 = vsel %vm987_vm3, %v919_v34, %v981_v35  ;;  %p1789_p13 = por %p1788_p12, %p1787_p11 }
 0x4d7   :  { %1267 = vmatprep.mubr.f32.mxu1 %v991_v50  ;;  %v1125_v10 = vrot.slane %v1120_v46, %v2283_v11  ;;  %v1129_v8 = vrot.slane %v1120_v46, %v2288_v29 }
 0x4d8   :  { %1268 = vmatmul.mubr.f32.vlgmr.msra.gmra.mxu1 %v990_v18  ;;  %v2446_v18 = vld [vmem:[#allocation40_spill] sm:$0xff]  ;;  %p1790_p0 = pnand %p1789_p13, %p1783_p10 }
 0x595   :  { %v1198_v60 = vpop.f32.mrf.mxu0 }
 0x596   :  { %v1199_v12 = vadd.f32 %v1198_v60, %v1125_v10  ;;  %v2450_v10 = vld [vmem:[#allocation16_spill] sm:$0xff] }
 0x597   :  { %v1200_v58 = vpop.f32.mrf.mxu0  ;;  %v2451_v60 = vld [vmem:[#allocation20_spill] sm:$0xff] }
 0x598   :  { %v1201_v0 = vadd.f32 %v1200_v58, %v1129_v8  ;;  %v1269_v37 = vpop.f32.mrf.mxu1  ;;  %v2452_v58 = vld [vmem:[#allocation26_spill] sm:$0xff] }
 0x599   :  { %v1270_v24 = vadd.f32 %v1269_v37, %v1199_v12  ;;  %v2453_v37 = vld [vmem:[#allocation28_spill] sm:$0xff] }
 0x59a   :  { %v1271_v45 = vpop.f32.mrf.mxu1 }
 0x59b   :  { %v1448_v30 = vmul.f32 -1.442695, %v1270_v24  ;;  %v1272_v15 = vadd.f32 %v1271_v45, %v1201_v0  ;;  %v2454_v45 = vld [vmem:[#allocation46_spill] sm:$0xff] }
 0x59d   :  { %1702 = vpow2.f32 %v1448_v30  ;;  %v1449_v26 = vmul.f32 -1.442695, %v1272_v15  ;;  %v2455_v30 = vld [vmem:[#allocation44_spill] sm:$0xff]  ;;  %v2456_v15 = vld [vmem:[#allocation18_spill] sm:$0xff] }
 0x59f   :  { %1704 = vpow2.f32 %v1449_v26 }
 0x5aa   :  { %v1703_v19 = vpop.eup %1702 }
 0x5ab   :  { %v1280_v59 = vadd.f32 1.0, %v1703_v19  ;;  %v2457_v19 = vld [vmem:[#allocation22_spill] sm:$0xff] }
 0x5ac   :  { %v1705_v2 = vpop.eup %1704 }
 0x5ad   :  { %1706 = vrcp.f32 %v1280_v59  ;;  %v1281_v52 = vadd.f32 1.0, %v1705_v2  ;;  %v2458_v2 = vld [vmem:[#allocation24_spill] sm:$0xff] }
 0x5af   :  { %1708 = vrcp.f32 %v1281_v52 }
 0x5ba   :  { %v1707_v36 = vpop.eup %1706 }
 0x5bb   :  { %v1289_v42 = vrot.slane %v1707_v36, %v2283_v11  ;;  %v1313_v51 = vrot.slane %v1707_v36, %v2288_v29  ;;  %v2459_v36 = vld [vmem:[#allocation30_spill] sm:$0xff] }
 0x5bc   :  { %v1709_v50 = vpop.eup %1708 }
 0x5bd   :  { %v1294_v14 = vmul.f32 %v1289_v42, %v2046_v17  ;;  %v1296_v31 = vmul.f32 %v1289_v42, %v2056_v23  ;;  %v1298_v32 = vmul.f32 %v1289_v42, %v2066_v28  ;;  %v1300_v5 = vmul.f32 %v1289_v42, %v2092_v33 }
 0x5be   :  { %v1302_v1 = vmul.f32 %v1289_v42, %v2124_v56  ;;  %v1304_v57 = vmul.f32 %v1289_v42, %v2138_v63  ;;  %v1306_v7 = vmul.f32 %v1289_v42, %v2258_v9  ;;  %v1308_v41 = vmul.f32 %v1289_v42, %v2238_v61 }
 0x5bf   :  { %v1318_v34 = vmul.f32 %v1313_v51, %v2082_v39  ;;  %v1320_v35 = vmul.f32 %v1313_v51, %v2102_v48  ;;  %v1322_v17 = vmul.f32 %v1313_v51, %v2112_v54  ;;  %v1324_v23 = vmul.f32 %v1313_v51, %v2148_v4 }
 0x5c0   :  { %v1326_v28 = vmul.f32 %v1313_v51, %v2198_v25  ;;  %v1328_v33 = vmul.f32 %v1313_v51, %v2168_v13  ;;  %v1330_v56 = vmul.f32 %v1313_v51, %v2228_v44  ;;  %v1332_v63 = vmul.f32 %v1313_v51, %v2214_v21  ;;  %v2460_v51 = vld [vmem:[#allocation36_spill] sm:$0xff] }
 0x5c1   :  { %v1334_v9 = vadd.f32 %v2043_v16, %v1294_v14  ;;  %v1336_v61 = vadd.f32 %v2053_v22, %v1296_v31  ;;  %v1338_v39 = vadd.f32 %v2063_v27, %v1298_v32  ;;  %v1340_v48 = vadd.f32 %v2089_v43, %v1300_v5  ;;  %v2444_v27 = vld [vmem:[#allocation34_spill] sm:$0xff]  ;;  %v2461_v31 = vld [vmem:[#allocation33_spill] sm:$0xff] }
 0x5c2   :  { %v1342_v54 = vadd.f32 %v2121_v55, %v1302_v1  ;;  %v1344_v4 = vadd.f32 %v2135_v62, %v1304_v57  ;;  %v1346_v25 = vadd.f32 %v2255_v40, %v1306_v7  ;;  %v1348_v13 = vadd.f32 %v2235_v6, %v1308_v41  ;;  %v2445_v55 = vld [vmem:[#allocation31_spill] sm:$0xff]  ;;  %v2462_v5 = vld [vmem:[#allocation42_spill] sm:$0xff] }
 0x5c3   :  { %v1350_v44 = vadd.f32 %v2079_v38, %v1318_v34  ;;  %v1352_v21 = vadd.f32 %v2099_v47, %v1320_v35  ;;  %v1354_v16 = vadd.f32 %v2109_v53, %v1322_v17  ;;  %v1356_v22 = vadd.f32 %v2145_v3, %v1324_v23  ;;  %1366 = vst [vmem:[#allocation7] sm:$0xff] %v1334_v9  ;;  %v2448_v53 = vld [vmem:[#allocation12_spill] sm:$0xff]  ;;  %v2463_v57 = vld [vmem:[#allocation39_spill] sm:$0xff]  ;;  %v2465_v35 = vld [vmem:[#allocation13_spill] sm:$0xff] }
 0x5c4   :  { %1368 = vst [vmem:[#allocation7 + $0x10] sm:$0xff] %v1336_v61  ;;  %1370 = vst [vmem:[#allocation7 + $0x20] sm:$0xff] %v1338_v39  ;;  %v1358_v43 = vadd.f32 %v2444_v27, %v1326_v28  ;;  %v1360_v62 = vadd.f32 %v2445_v55, %v1328_v33  ;;  %v1362_v40 = vadd.f32 %v2446_v18, %v1330_v56  ;;  %v2464_v41 = vld [vmem:[#allocation11_spill] sm:$0xff]  ;;  %v2475_v27 = vld [vmem:[#allocation29_spill] sm:$0xff] }
 0x5c5   :  { %1372 = vst [vmem:[#allocation7 + $0x30] sm:$0xff] %v1340_v48  ;;  %v1364_v6 = vadd.f32 %v2447_v49, %v1332_v63  ;;  %1374 = vst [vmem:[#allocation7 + $0x40] sm:$0xff] %v1342_v54  ;;  %v1293_v38 = vrot.slane %v1709_v50, %v2283_v11  ;;  %v1317_v47 = vrot.slane %v1709_v50, %v2288_v29  ;;  %v2466_v23 = vld [vmem:[#allocation15_spill] sm:$0xff]  ;;  %v2468_v63 = vld [vmem:[#allocation25_spill] sm:$0xff] }
 0x5c6   :  { %1376 = vst [vmem:[#allocation7 + $0x50] sm:$0xff] %v1344_v4  ;;  %1378 = vst [vmem:[#allocation7 + $0x60] sm:$0xff] %v1346_v25  ;;  %v2467_v33 = vld [vmem:[#allocation19_spill] sm:$0xff]  ;;  %v2470_v48 = vld [vmem:[#allocation45_spill] sm:$0xff] }
 0x5c7   :  { %1380 = vst [vmem:[#allocation7 + $0x70] sm:$0xff] %v1348_v13  ;;  %1382 = vst [vmem:[#allocation7 + $0x80] sm:$0xff] %v1350_v44  ;;  %v1295_v3 = vmul.f32 %v1293_v38, %v2448_v53  ;;  %v1297_v46 = vmul.f32 %v1293_v38, %v2449_v20  ;;  %v1299_v8 = vmul.f32 %v1293_v38, %v2450_v10  ;;  %v2469_v61 = vld [vmem:[#allocation27_spill] sm:$0xff]  ;;  %v2472_v25 = vld [vmem:[#allocation17_spill] sm:$0xff] }
 0x5c8   :  { %1384 = vst [vmem:[#allocation7 + $0x90] sm:$0xff] %v1352_v21  ;;  %1386 = vst [vmem:[#allocation7 + $0xa0] sm:$0xff] %v1354_v16  ;;  %v1301_v12 = vmul.f32 %v1293_v38, %v2451_v60  ;;  %v1303_v0 = vmul.f32 %v1293_v38, %v2452_v58  ;;  %v1305_v24 = vmul.f32 %v1293_v38, %v2453_v37  ;;  %v2471_v54 = vld [vmem:[#allocation43_spill] sm:$0xff]  ;;  %v2473_v44 = vld [vmem:[#allocation21_spill] sm:$0xff] }
 0x5c9   :  { %1388 = vst [vmem:[#allocation7 + $0xb0] sm:$0xff] %v1356_v22  ;;  %1390 = vst [vmem:[#allocation7 + $0xc0] sm:$0xff] %v1358_v43  ;;  %v1307_v11 = vmul.f32 %v1293_v38, %v2454_v45  ;;  %v1309_v29 = vmul.f32 %v1293_v38, %v2455_v30  ;;  %v1319_v26 = vmul.f32 %v1317_v47, %v2456_v15  ;;  %v2474_v16 = vld [vmem:[#allocation23_spill] sm:$0xff]  ;;  %v2477_v18 = vld [vmem:[#allocation32_spill] sm:$0xff] }
 0x5ca   :  { %1392 = vst [vmem:[#allocation7 + $0xd0] sm:$0xff] %v1360_v62  ;;  %1394 = vst [vmem:[#allocation7 + $0xe0] sm:$0xff] %v1362_v40  ;;  %v1321_v59 = vmul.f32 %v1317_v47, %v2457_v19  ;;  %v1323_v52 = vmul.f32 %v1317_v47, %v2458_v2  ;;  %v1325_v42 = vmul.f32 %v1317_v47, %v2459_v36  ;;  %v2476_v55 = vld [vmem:[#allocation35_spill] sm:$0xff]  ;;  %v2478_v49 = vld [vmem:[#allocation41_spill] sm:$0xff] }
 0x5cb   :  { %1396 = vst [vmem:[#allocation7 + $0xf0] sm:$0xff] %v1364_v6  ;;  %v1327_v14 = vmul.f32 %v1317_v47, %v2460_v51  ;;  %v1329_v32 = vmul.f32 %v1317_v47, %v2461_v31  ;;  %v1331_v1 = vmul.f32 %v1317_v47, %v2462_v5  ;;  %v1333_v7 = vmul.f32 %v1317_v47, %v2463_v57  ;;  %v2479_v38 = vld [vmem:[#allocation38_spill] sm:$0xff] }
 0x5cc   :  { %v1335_v34 = vadd.f32 %v2464_v41, %v1295_v3  ;;  %v1337_v17 = vadd.f32 %v2465_v35, %v1297_v46  ;;  %v1339_v28 = vadd.f32 %v2466_v23, %v1299_v8  ;;  %v1341_v56 = vadd.f32 %v2467_v33, %v1301_v12 }
 0x5cd   :  { %v1343_v9 = vadd.f32 %v2468_v63, %v1303_v0  ;;  %v1345_v39 = vadd.f32 %v2469_v61, %v1305_v24  ;;  %v1347_v50 = vadd.f32 %v2470_v48, %v1307_v11  ;;  %v1349_v4 = vadd.f32 %v2471_v54, %v1309_v29 }
 0x5ce   :  { %v1351_v13 = vadd.f32 %v2472_v25, %v1319_v26  ;;  %v1353_v21 = vadd.f32 %v2473_v44, %v1321_v59  ;;  %v1355_v22 = vadd.f32 %v2474_v16, %v1323_v52  ;;  %v1357_v43 = vadd.f32 %v2475_v27, %v1325_v42  ;;  %1367 = vst [vmem:[#allocation7 + $0x8] sm:$0xff] %v1335_v34 }
 0x5cf   :  { %1369 = vst [vmem:[#allocation7 + $0x18] sm:$0xff] %v1337_v17  ;;  %1371 = vst [vmem:[#allocation7 + $0x28] sm:$0xff] %v1339_v28  ;;  %v1359_v62 = vadd.f32 %v2476_v55, %v1327_v14  ;;  %v1361_v40 = vadd.f32 %v2477_v18, %v1329_v32  ;;  %v1363_v6 = vadd.f32 %v2478_v49, %v1331_v1 }
 0x5d0   :  { %1373 = vst [vmem:[#allocation7 + $0x38] sm:$0xff] %v1341_v56  ;;  %v1365_v47 = vadd.f32 %v2479_v38, %v1333_v7  ;;  %1375 = vst [vmem:[#allocation7 + $0x48] sm:$0xff] %v1343_v9 }
 0x5d1   :  { %1377 = vst [vmem:[#allocation7 + $0x58] sm:$0xff] %v1345_v39  ;;  %1379 = vst [vmem:[#allocation7 + $0x68] sm:$0xff] %v1347_v50 }
 0x5d2   :  { %1381 = vst [vmem:[#allocation7 + $0x78] sm:$0xff] %v1349_v4  ;;  %1383 = vst [vmem:[#allocation7 + $0x88] sm:$0xff] %v1351_v13 }
 0x5d3   :  { %1385 = vst [vmem:[#allocation7 + $0x98] sm:$0xff] %v1353_v21  ;;  %1387 = vst [vmem:[#allocation7 + $0xa8] sm:$0xff] %v1355_v22 }
 0x5d4   :  { %1389 = vst [vmem:[#allocation7 + $0xb8] sm:$0xff] %v1357_v43  ;;  %1391 = vst [vmem:[#allocation7 + $0xc8] sm:$0xff] %v1359_v62 }
 0x5d5   :  { %1393 = vst [vmem:[#allocation7 + $0xd8] sm:$0xff] %v1361_v40  ;;  %1395 = vst [vmem:[#allocation7 + $0xe8] sm:$0xff] %v1363_v6 }
 0x5d6   :  { %1397 = vst [vmem:[#allocation7 + $0xf8] sm:$0xff] %v1365_v47 }
 0x5d7   :  { %1793 = shalt.err (!%p1790_p0)
}
 0x5d8   :  { %1409 = dma.vmem_to_hbm [thread:$0]  %s1404_s13, 4096, %s2371_s5, [#allocation4], %s1809_s21, %s1809_s21, %s1810_s22  }
 0x5d9   :  { %1806 = dma.done.wait [#allocation4], 4096  }
 0x5da   :  { %1807 = vsyncadd [#allocation4], 4294963200 }
 0x5db   :  { %1413 = vsyncpa [#allocation3], 1 }
 0x5dc   :  { %1414 = vsyncpa [#allocation6], 1 }
 0x5dd   :  { %1415 = vsyncpa [#allocation4], 1 }

</bundles_post_ra>
